<compile_context>
chip_gen: v5e
topology: v5e:2x2
jax: 0.10.0
libtpu: 0.0.40
codegen_flags: <defaults>
</compile_context>

<pallas_src>
import functools

import jax
import jax.numpy as jnp
import numpy as np
from jax import lax
from jax.experimental import pallas as pl
from jax.experimental.pallas import tpu as pltpu

_TAPS = tuple((dy, dx) for dy in (-1, 0, 1) for dx in (-1, 0, 1))
_PARAM_ORDER = ('w1', 'b1', 'w2', 'b2',
                'caw1_t', 'cab1', 'caw2', 'cab2',
                'paw1', 'pab1', 'paw2_t', 'pab2')


# ----------------------------------------------------------------------------
# Pallas kernel: all FeatAttnBlocks for one batch element, layout (C, N=H*W)
# ----------------------------------------------------------------------------
def _feat_attn_dec_kernel(x_ref, mask_ref,
                          w1_ref, b1_ref, w2_ref, b2_ref,
                          caw1t_ref, cab1_ref, caw2_ref, cab2_ref,
                          paw1_ref, pab1_ref, paw2t_ref, pab2_ref,
                          o_ref, *, height, width, num_blocks):
    n = height * width
    x = x_ref[0]                                           # (C, N) f32
    tap_masks = [mask_ref[k:k + 1, :] for k in range(9)]   # each (1, N), hoisted

    def conv3x3(z, w, b):
        # z: (C, N) f32;  w: (C, 9C) (f32 or bf16);  b: (C, 1) f32
        parts = []
        for k, (dy, dx) in enumerate(_TAPS):
            off = dy * width + dx                 # output pixel i reads input i+off
            if off == 0:
                parts.append(z)                   # center tap: no shift, no mask
            else:
                # roll so that result[:, i] = z[:, (i + off) % n]; wrapped /
                # out-of-image positions are zeroed by the boundary mask.
                shifted = pltpu.roll(z, shift=(-off) % n, axis=1)
                parts.append(shifted * tap_masks[k])
        stacked = jnp.concatenate(parts, axis=0)            # (9C, N)
        acc = jnp.dot(w, stacked.astype(w.dtype),           # single fused MXU pass
                      preferred_element_type=jnp.float32)   # (C, N) f32
        return acc + b

    out = x
    for blk in range(num_blocks):
        inp = out
        # feat = relu(conv1(inp)) + inp ; feat = conv2(feat)
        feat = jnp.maximum(conv3x3(inp, w1_ref[blk], b1_ref[blk]), 0.0)
        feat = feat + inp
        feat = conv3x3(feat, w2_ref[blk], b2_ref[blk])

        # ---- channel attention: spatial mean + two CxC projections (VPU/XLU) ----
        ca = jnp.mean(feat, axis=1, keepdims=True)                    # (C, 1)
        h = jnp.sum(caw1t_ref[blk] * ca, axis=0, keepdims=True)       # (1, C)
        h = jnp.maximum(h + cab1_ref[blk], 0.0)
        s = jnp.sum(caw2_ref[blk] * h, axis=1, keepdims=True)         # (C, 1)
        s = jax.nn.sigmoid(s + cab2_ref[blk])
        feat = feat * s                                               # lane-broadcast

        # ---- pixel attention: 1x1 conv (MXU) + 1-channel reduce (VPU/XLU) ----
        ph = jnp.dot(paw1_ref[blk], feat, preferred_element_type=jnp.float32)
        ph = jnp.maximum(ph + pab1_ref[blk], 0.0)                     # (C, N)
        pw = jnp.sum(paw2t_ref[blk] * ph, axis=0, keepdims=True)      # (1, N)
        pw = jax.nn.sigmoid(pw + pab2_ref[blk])
        feat = feat * pw                                              # sublane-broadcast

        out = feat + inp

    o_ref[0] = out.astype(o_ref.dtype)                                # full-lane store


# ----------------------------------------------------------------------------
# Wrapper: one pallas_call for the whole FeatAttnDecBlock, grid over batch
# ----------------------------------------------------------------------------
def _const_spec(arr):
    zeros = (0,) * arr.ndim
    return pl.BlockSpec(arr.shape, lambda i, _z=zeros: _z)


def feat_attn_dec_block(x_bcn, params, tap_masks, height, width):
    b, c, n = x_bcn.shape
    assert n == height * width
    num_blocks = params['w1'].shape[0]
    ordered = [params[name] for name in _PARAM_ORDER]

    kernel = functools.partial(_feat_attn_dec_kernel,
                               height=height, width=width, num_blocks=num_blocks)
    in_specs = ([pl.BlockSpec((1, c, n), lambda i: (i, 0, 0)),
                 _const_spec(tap_masks)]
                + [_const_spec(a) for a in ordered])

    return pl.pallas_call(
        kernel,
        out_shape=jax.ShapeDtypeStruct((b, c, n), x_bcn.dtype),
        grid=(b,),
        in_specs=in_specs,
        out_specs=pl.BlockSpec((1, c, n), lambda i: (i, 0, 0)),
        compiler_params=pltpu.CompilerParams(
            dimension_semantics=("parallel",),        # v7x: split batch across TCs
            vmem_limit_bytes=16 * 1024 * 1024),       # tiny footprint; safe on 64 MiB v7x
    )(x_bcn, tap_masks, *ordered)


# ----------------------------------------------------------------------------
# Glue: boundary masks, synthetic torch-layout params, kernel-layout packing
# ----------------------------------------------------------------------------
def build_tap_masks(height, width):
    yy = np.repeat(np.arange(height), width)
    xx = np.tile(np.arange(width), height)
    masks = []
    for dy, dx in _TAPS:
        valid = ((yy + dy >= 0) & (yy + dy < height) &
                 (xx + dx >= 0) & (xx + dx < width))
        masks.append(valid.astype(np.float32))
    return jnp.asarray(np.stack(masks))               # (9, N)


def init_torch_params(key, num_blocks, c):
    """Deterministic synthetic params in PyTorch layout (out, in, kh, kw) / (out, in)."""
    blocks = []
    for _ in range(num_blocks):
        key, *ks = jax.random.split(key, 13)
        nrm = lambda k, shp: 0.1 * jax.random.normal(k, shp, dtype=jnp.float32)
        blocks.append(dict(
            w1=nrm(ks[0], (c, c, 3, 3)), b1=nrm(ks[1], (c,)),
            w2=nrm(ks[2], (c, c, 3, 3)), b2=nrm(ks[3], (c,)),
            ca_w1=nrm(ks[4], (c, c)), ca_b1=nrm(ks[5], (c,)),
            ca_w2=nrm(ks[6], (c, c)), ca_b2=nrm(ks[7], (c,)),
            pa_w1=nrm(ks[8], (c, c)), pa_b1=nrm(ks[9], (c,)),
            pa_w2=nrm(ks[10], (1, c)), pa_b2=nrm(ks[11], (1,)),
        ))
    return blocks


def to_kernel_params(torch_blocks, conv_dtype=jnp.float32):
    """Stack per-block params along a leading axis and repack for (C, N) layout."""
    c = torch_blocks[0]['b1'].shape[0]

    def pack_conv(w):   # (O, I, 3, 3) -> (O, 9*I), column block k = tap_k
        cols = [w[:, :, dy + 1, dx + 1] for (dy, dx) in _TAPS]
        return jnp.concatenate(cols, axis=1)

    def stack(fn, name):
        return jnp.stack([fn(p[name]) for p in torch_blocks])

    return dict(
        w1=stack(pack_conv, 'w1').astype(conv_dtype),
        b1=stack(lambda b: b.reshape(c, 1), 'b1'),
        w2=stack(pack_conv, 'w2').astype(conv_dtype),
        b2=stack(lambda b: b.reshape(c, 1), 'b2'),
        caw1_t=stack(lambda w: w.T, 'ca_w1'),                 # (I, O)
        cab1=stack(lambda b: b.reshape(1, c), 'ca_b1'),       # row
        caw2=stack(lambda w: w, 'ca_w2'),                     # (O, I)
        cab2=stack(lambda b: b.reshape(c, 1), 'ca_b2'),       # col
        paw1=stack(lambda w: w, 'pa_w1'),                     # (O, I)
        pab1=stack(lambda b: b.reshape(c, 1), 'pa_b1'),
        paw2_t=stack(lambda w: w.reshape(1, c).T, 'pa_w2'),   # (C, 1)
        pab2=stack(lambda b: b.reshape(1, 1), 'pa_b2'),
    )


# ----------------------------------------------------------------------------
# Pure-JAX reference (NCHW, matches PyTorch exactly) for correctness check
# ----------------------------------------------------------------------------
def _ref_conv3x3(x, w, b):   # w: (O, I, 3, 3)
    y = lax.conv_general_dilated(x, w, (1, 1), 'SAME',
                                 dimension_numbers=('NCHW', 'OIHW', 'NCHW'))
    return y + b.reshape(1, -1, 1, 1)


def _ref_conv1x1(x, w, b):   # w: (O, I)
    return jnp.einsum('bihw,oi->bohw', x, w) + b.reshape(1, -1, 1, 1)


def ref_block(x, p):
    feat = jax.nn.relu(_ref_conv3x3(x, p['w1'], p['b1']))
    feat = feat + x
    feat = _ref_conv3x3(feat, p['w2'], p['b2'])
    wgt = feat.mean(axis=(2, 3), keepdims=True)
    wgt = jax.nn.relu(_ref_conv1x1(wgt, p['ca_w1'], p['ca_b1']))
    wgt = jax.nn.sigmoid(_ref_conv1x1(wgt, p['ca_w2'], p['ca_b2']))
    feat = feat * wgt
    pw = jax.nn.relu(_ref_conv1x1(feat, p['pa_w1'], p['pa_b1']))
    pw = jax.nn.sigmoid(_ref_conv1x1(pw, p['pa_w2'], p['pa_b2']))
    feat = feat * pw
    return feat + x


def ref_model(x_nchw, torch_params):
    out = x_nchw
    for p in torch_params:
        out = ref_block(out, p)
    return out


# ----------------------------------------------------------------------------
if __name__ == "__main__":
    B, C, H, W = 2, 8, 16, 16
    NUM_BLOCKS = 2

    key = jax.random.PRNGKey(0)
    k_x, k_p = jax.random.split(key)

    # PyTorch-style NCHW input; kernel layout (B, C, H*W) is a pure reshape.
    x_nchw = jax.random.normal(k_x, (B, C, H, W), dtype=jnp.float32)
    x_bcn = x_nchw.reshape(B, C, H * W)

    torch_params = init_torch_params(k_p, NUM_BLOCKS, C)
    masks = build_tap_masks(H, W)

    # Single Pallas compilation / run: f32 MXU path (safe on v5e/v6e/v7x).
    p_f32 = to_kernel_params(torch_params, jnp.float32)
    out_f32 = feat_attn_dec_block(x_bcn, p_f32, masks, H, W)
    out_f32 = np.asarray(jax.block_until_ready(out_f32)).reshape(B, C, H, W)

    ref = np.asarray(jax.block_until_ready(ref_model(x_nchw, torch_params)))
    if not np.allclose(out_f32, ref, atol=1e-4, rtol=1e-4):
        raise AssertionError("Pallas kernel output mismatch vs JAX reference")

    print("KERNEL_OK")
</pallas_src>

<mosaic_0001>
module attributes {stable_mosaic.version = 11 : i64} {
  func.func @_feat_attn_dec_kernel(%arg0: i32, %arg1: memref<1x8x256xf32, #tpu.memory_space<vmem>>, %arg2: memref<9x256xf32, #tpu.memory_space<vmem>>, %arg3: memref<2x8x72xf32, #tpu.memory_space<vmem>>, %arg4: memref<2x8x1xf32, #tpu.memory_space<vmem>>, %arg5: memref<2x8x72xf32, #tpu.memory_space<vmem>>, %arg6: memref<2x8x1xf32, #tpu.memory_space<vmem>>, %arg7: memref<2x8x8xf32, #tpu.memory_space<vmem>>, %arg8: memref<2x1x8xf32, #tpu.memory_space<vmem>>, %arg9: memref<2x8x8xf32, #tpu.memory_space<vmem>>, %arg10: memref<2x8x1xf32, #tpu.memory_space<vmem>>, %arg11: memref<2x8x8xf32, #tpu.memory_space<vmem>>, %arg12: memref<2x8x1xf32, #tpu.memory_space<vmem>>, %arg13: memref<2x8x1xf32, #tpu.memory_space<vmem>>, %arg14: memref<2x1x1xf32, #tpu.memory_space<vmem>>, %arg15: memref<1x8x256xf32, #tpu.memory_space<vmem>>) attributes {dimension_semantics = [#tpu.dimension_semantics<parallel>], iteration_bounds = array<i64: 2>, scalar_prefetch = 0 : i64, scratch_operands = 0 : i64, tpu.core_type = #tpu.core_type<tc>, window_params = [{transform_indices = @transform_0, window_bounds = array<i64: 1, 8, 256>}, {pipeline_mode = #tpu.pipeline_mode<synchronous>, transform_indices = @transform_1, window_bounds = array<i64: 9, 256>}, {pipeline_mode = #tpu.pipeline_mode<synchronous>, transform_indices = @transform_2, window_bounds = array<i64: 2, 8, 72>}, {pipeline_mode = #tpu.pipeline_mode<synchronous>, transform_indices = @transform_3, window_bounds = array<i64: 2, 8, 1>}, {pipeline_mode = #tpu.pipeline_mode<synchronous>, transform_indices = @transform_4, window_bounds = array<i64: 2, 8, 72>}, {pipeline_mode = #tpu.pipeline_mode<synchronous>, transform_indices = @transform_5, window_bounds = array<i64: 2, 8, 1>}, {pipeline_mode = #tpu.pipeline_mode<synchronous>, transform_indices = @transform_6, window_bounds = array<i64: 2, 8, 8>}, {pipeline_mode = #tpu.pipeline_mode<synchronous>, transform_indices = @transform_7, window_bounds = array<i64: 2, 1, 8>}, {pipeline_mode = #tpu.pipeline_mode<synchronous>, transform_indices = @transform_8, window_bounds = array<i64: 2, 8, 8>}, {pipeline_mode = #tpu.pipeline_mode<synchronous>, transform_indices = @transform_9, window_bounds = array<i64: 2, 8, 1>}, {pipeline_mode = #tpu.pipeline_mode<synchronous>, transform_indices = @transform_10, window_bounds = array<i64: 2, 8, 8>}, {pipeline_mode = #tpu.pipeline_mode<synchronous>, transform_indices = @transform_11, window_bounds = array<i64: 2, 8, 1>}, {pipeline_mode = #tpu.pipeline_mode<synchronous>, transform_indices = @transform_12, window_bounds = array<i64: 2, 8, 1>}, {pipeline_mode = #tpu.pipeline_mode<synchronous>, transform_indices = @transform_13, window_bounds = array<i64: 2, 1, 1>}, {transform_indices = @transform_14, window_bounds = array<i64: 1, 8, 256>}]} {
    %c0 = arith.constant 0 : index
    %c0_0 = arith.constant 0 : index
    %c0_1 = arith.constant 0 : index
    %0 = vector.load %arg1[%c0, %c0_0, %c0_1] : memref<1x8x256xf32, #tpu.memory_space<vmem>>, vector<1x8x256xf32>
    %1 = vector.shape_cast %0 : vector<1x8x256xf32> to vector<8x256xf32>
    %c0_2 = arith.constant 0 : index
    %c0_3 = arith.constant 0 : index
    %2 = vector.load %arg2[%c0_2, %c0_3] : memref<9x256xf32, #tpu.memory_space<vmem>>, vector<1x256xf32>
    %c1 = arith.constant 1 : index
    %c0_4 = arith.constant 0 : index
    %3 = vector.load %arg2[%c1, %c0_4] : memref<9x256xf32, #tpu.memory_space<vmem>>, vector<1x256xf32>
    %c2 = arith.constant 2 : index
    %c0_5 = arith.constant 0 : index
    %4 = vector.load %arg2[%c2, %c0_5] : memref<9x256xf32, #tpu.memory_space<vmem>>, vector<1x256xf32>
    %c3 = arith.constant 3 : index
    %c0_6 = arith.constant 0 : index
    %5 = vector.load %arg2[%c3, %c0_6] : memref<9x256xf32, #tpu.memory_space<vmem>>, vector<1x256xf32>
    %c5 = arith.constant 5 : index
    %c0_7 = arith.constant 0 : index
    %6 = vector.load %arg2[%c5, %c0_7] : memref<9x256xf32, #tpu.memory_space<vmem>>, vector<1x256xf32>
    %c6 = arith.constant 6 : index
    %c0_8 = arith.constant 0 : index
    %7 = vector.load %arg2[%c6, %c0_8] : memref<9x256xf32, #tpu.memory_space<vmem>>, vector<1x256xf32>
    %c7 = arith.constant 7 : index
    %c0_9 = arith.constant 0 : index
    %8 = vector.load %arg2[%c7, %c0_9] : memref<9x256xf32, #tpu.memory_space<vmem>>, vector<1x256xf32>
    %c8 = arith.constant 8 : index
    %c0_10 = arith.constant 0 : index
    %9 = vector.load %arg2[%c8, %c0_10] : memref<9x256xf32, #tpu.memory_space<vmem>>, vector<1x256xf32>
    %c0_11 = arith.constant 0 : index
    %c0_12 = arith.constant 0 : index
    %c0_13 = arith.constant 0 : index
    %10 = vector.load %arg3[%c0_11, %c0_12, %c0_13] : memref<2x8x72xf32, #tpu.memory_space<vmem>>, vector<1x8x72xf32>
    %11 = vector.shape_cast %10 : vector<1x8x72xf32> to vector<8x72xf32>
    %c0_14 = arith.constant 0 : index
    %c0_15 = arith.constant 0 : index
    %c0_16 = arith.constant 0 : index
    %12 = vector.load %arg4[%c0_14, %c0_15, %c0_16] : memref<2x8x1xf32, #tpu.memory_space<vmem>>, vector<1x8x1xf32>
    %13 = vector.shape_cast %12 : vector<1x8x1xf32> to vector<8x1xf32>
    %c17_i32 = arith.constant 17 : i32
    %14 = tpu.dynamic_rotate %1 by %c17_i32 dim 1 : vector<8x256xf32>, i32 -> vector<8x256xf32>
    %15 = vector.broadcast %2 : vector<1x256xf32> to vector<8x256xf32>
    %16 = arith.mulf %14, %15 : vector<8x256xf32>
    %c16_i32 = arith.constant 16 : i32
    %17 = tpu.dynamic_rotate %1 by %c16_i32 dim 1 : vector<8x256xf32>, i32 -> vector<8x256xf32>
    %18 = vector.broadcast %3 : vector<1x256xf32> to vector<8x256xf32>
    %19 = arith.mulf %17, %18 : vector<8x256xf32>
    %c15_i32 = arith.constant 15 : i32
    %20 = tpu.dynamic_rotate %1 by %c15_i32 dim 1 : vector<8x256xf32>, i32 -> vector<8x256xf32>
    %21 = vector.broadcast %4 : vector<1x256xf32> to vector<8x256xf32>
    %22 = arith.mulf %20, %21 : vector<8x256xf32>
    %c1_i32 = arith.constant 1 : i32
    %23 = tpu.dynamic_rotate %1 by %c1_i32 dim 1 : vector<8x256xf32>, i32 -> vector<8x256xf32>
    %24 = vector.broadcast %5 : vector<1x256xf32> to vector<8x256xf32>
    %25 = arith.mulf %23, %24 : vector<8x256xf32>
    %c255_i32 = arith.constant 255 : i32
    %26 = tpu.dynamic_rotate %1 by %c255_i32 dim 1 : vector<8x256xf32>, i32 -> vector<8x256xf32>
    %27 = vector.broadcast %6 : vector<1x256xf32> to vector<8x256xf32>
    %28 = arith.mulf %26, %27 : vector<8x256xf32>
    %c241_i32 = arith.constant 241 : i32
    %29 = tpu.dynamic_rotate %1 by %c241_i32 dim 1 : vector<8x256xf32>, i32 -> vector<8x256xf32>
    %30 = vector.broadcast %7 : vector<1x256xf32> to vector<8x256xf32>
    %31 = arith.mulf %29, %30 : vector<8x256xf32>
    %c240_i32 = arith.constant 240 : i32
    %32 = tpu.dynamic_rotate %1 by %c240_i32 dim 1 : vector<8x256xf32>, i32 -> vector<8x256xf32>
    %33 = vector.broadcast %8 : vector<1x256xf32> to vector<8x256xf32>
    %34 = arith.mulf %32, %33 : vector<8x256xf32>
    %c239_i32 = arith.constant 239 : i32
    %35 = tpu.dynamic_rotate %1 by %c239_i32 dim 1 : vector<8x256xf32>, i32 -> vector<8x256xf32>
    %36 = vector.broadcast %9 : vector<1x256xf32> to vector<8x256xf32>
    %37 = arith.mulf %35, %36 : vector<8x256xf32>
    %38 = tpu.concatenate %16, %19, %22, %25, %1, %28, %31, %34, %37 in 0 : vector<8x256xf32>, vector<8x256xf32>, vector<8x256xf32>, vector<8x256xf32>, vector<8x256xf32>, vector<8x256xf32>, vector<8x256xf32>, vector<8x256xf32>, vector<8x256xf32> -> vector<72x256xf32>
    %cst = arith.constant dense<0.000000e+00> : vector<8x256xf32>
    %39 = tpu.matmul %11, %38, %cst {dimension_numbers = #tpu.dot_dimension_numbers<[1], [0], [0], [1], [0, 0, 1, 1], [], []>} : vector<8x72xf32>, vector<72x256xf32>, vector<8x256xf32> -> vector<8x256xf32>
    %40 = vector.broadcast %13 : vector<8x1xf32> to vector<8x256xf32>
    %41 = arith.addf %39, %40 : vector<8x256xf32>
    %cst_17 = arith.constant 0.000000e+00 : f32
    %42 = vector.broadcast %cst_17 : f32 to vector<8x256xf32>
    %43 = arith.maximumf %41, %42 : vector<8x256xf32>
    %44 = arith.addf %43, %1 : vector<8x256xf32>
    %c0_18 = arith.constant 0 : index
    %c0_19 = arith.constant 0 : index
    %c0_20 = arith.constant 0 : index
    %45 = vector.load %arg5[%c0_18, %c0_19, %c0_20] : memref<2x8x72xf32, #tpu.memory_space<vmem>>, vector<1x8x72xf32>
    %46 = vector.shape_cast %45 : vector<1x8x72xf32> to vector<8x72xf32>
    %c0_21 = arith.constant 0 : index
    %c0_22 = arith.constant 0 : index
    %c0_23 = arith.constant 0 : index
    %47 = vector.load %arg6[%c0_21, %c0_22, %c0_23] : memref<2x8x1xf32, #tpu.memory_space<vmem>>, vector<1x8x1xf32>
    %48 = vector.shape_cast %47 : vector<1x8x1xf32> to vector<8x1xf32>
    %c17_i32_24 = arith.constant 17 : i32
    %49 = tpu.dynamic_rotate %44 by %c17_i32_24 dim 1 : vector<8x256xf32>, i32 -> vector<8x256xf32>
    %50 = vector.broadcast %2 : vector<1x256xf32> to vector<8x256xf32>
    %51 = arith.mulf %49, %50 : vector<8x256xf32>
    %c16_i32_25 = arith.constant 16 : i32
    %52 = tpu.dynamic_rotate %44 by %c16_i32_25 dim 1 : vector<8x256xf32>, i32 -> vector<8x256xf32>
    %53 = vector.broadcast %3 : vector<1x256xf32> to vector<8x256xf32>
    %54 = arith.mulf %52, %53 : vector<8x256xf32>
    %c15_i32_26 = arith.constant 15 : i32
    %55 = tpu.dynamic_rotate %44 by %c15_i32_26 dim 1 : vector<8x256xf32>, i32 -> vector<8x256xf32>
    %56 = vector.broadcast %4 : vector<1x256xf32> to vector<8x256xf32>
    %57 = arith.mulf %55, %56 : vector<8x256xf32>
    %c1_i32_27 = arith.constant 1 : i32
    %58 = tpu.dynamic_rotate %44 by %c1_i32_27 dim 1 : vector<8x256xf32>, i32 -> vector<8x256xf32>
    %59 = vector.broadcast %5 : vector<1x256xf32> to vector<8x256xf32>
    %60 = arith.mulf %58, %59 : vector<8x256xf32>
    %c255_i32_28 = arith.constant 255 : i32
    %61 = tpu.dynamic_rotate %44 by %c255_i32_28 dim 1 : vector<8x256xf32>, i32 -> vector<8x256xf32>
    %62 = vector.broadcast %6 : vector<1x256xf32> to vector<8x256xf32>
    %63 = arith.mulf %61, %62 : vector<8x256xf32>
    %c241_i32_29 = arith.constant 241 : i32
    %64 = tpu.dynamic_rotate %44 by %c241_i32_29 dim 1 : vector<8x256xf32>, i32 -> vector<8x256xf32>
    %65 = vector.broadcast %7 : vector<1x256xf32> to vector<8x256xf32>
    %66 = arith.mulf %64, %65 : vector<8x256xf32>
    %c240_i32_30 = arith.constant 240 : i32
    %67 = tpu.dynamic_rotate %44 by %c240_i32_30 dim 1 : vector<8x256xf32>, i32 -> vector<8x256xf32>
    %68 = vector.broadcast %8 : vector<1x256xf32> to vector<8x256xf32>
    %69 = arith.mulf %67, %68 : vector<8x256xf32>
    %c239_i32_31 = arith.constant 239 : i32
    %70 = tpu.dynamic_rotate %44 by %c239_i32_31 dim 1 : vector<8x256xf32>, i32 -> vector<8x256xf32>
    %71 = vector.broadcast %9 : vector<1x256xf32> to vector<8x256xf32>
    %72 = arith.mulf %70, %71 : vector<8x256xf32>
    %73 = tpu.concatenate %51, %54, %57, %60, %44, %63, %66, %69, %72 in 0 : vector<8x256xf32>, vector<8x256xf32>, vector<8x256xf32>, vector<8x256xf32>, vector<8x256xf32>, vector<8x256xf32>, vector<8x256xf32>, vector<8x256xf32>, vector<8x256xf32> -> vector<72x256xf32>
    %cst_32 = arith.constant dense<0.000000e+00> : vector<8x256xf32>
    %74 = tpu.matmul %46, %73, %cst_32 {dimension_numbers = #tpu.dot_dimension_numbers<[1], [0], [0], [1], [0, 0, 1, 1], [], []>} : vector<8x72xf32>, vector<72x256xf32>, vector<8x256xf32> -> vector<8x256xf32>
    %75 = vector.broadcast %48 : vector<8x1xf32> to vector<8x256xf32>
    %76 = arith.addf %74, %75 : vector<8x256xf32>
    %cst_33 = arith.constant dense<0.000000e+00> : vector<8xf32>
    %77 = vector.multi_reduction <add>, %76, %cst_33 [1] : vector<8x256xf32> to vector<8xf32>
    %78 = vector.shape_cast %77 : vector<8xf32> to vector<8x1xf32>
    %cst_34 = arith.constant 2.560000e+02 : f32
    %79 = vector.broadcast %cst_34 : f32 to vector<8x1xf32>
    %80 = arith.divf %78, %79 : vector<8x1xf32>
    %c0_35 = arith.constant 0 : index
    %c0_36 = arith.constant 0 : index
    %c0_37 = arith.constant 0 : index
    %81 = vector.load %arg7[%c0_35, %c0_36, %c0_37] : memref<2x8x8xf32, #tpu.memory_space<vmem>>, vector<1x8x8xf32>
    %82 = vector.shape_cast %81 : vector<1x8x8xf32> to vector<8x8xf32>
    %83 = vector.broadcast %80 : vector<8x1xf32> to vector<8x8xf32>
    %84 = arith.mulf %82, %83 : vector<8x8xf32>
    %cst_38 = arith.constant dense<0.000000e+00> : vector<8xf32>
    %85 = vector.multi_reduction <add>, %84, %cst_38 [0] : vector<8x8xf32> to vector<8xf32>
    %86 = vector.shape_cast %85 : vector<8xf32> to vector<1x8xf32>
    %c0_39 = arith.constant 0 : index
    %c0_40 = arith.constant 0 : index
    %c0_41 = arith.constant 0 : index
    %87 = vector.load %arg8[%c0_39, %c0_40, %c0_41] : memref<2x1x8xf32, #tpu.memory_space<vmem>>, vector<1x1x8xf32>
    %88 = vector.shape_cast %87 : vector<1x1x8xf32> to vector<1x8xf32>
    %89 = arith.addf %86, %88 : vector<1x8xf32>
    %cst_42 = arith.constant 0.000000e+00 : f32
    %90 = vector.broadcast %cst_42 : f32 to vector<1x8xf32>
    %91 = arith.maximumf %89, %90 : vector<1x8xf32>
    %c0_43 = arith.constant 0 : index
    %c0_44 = arith.constant 0 : index
    %c0_45 = arith.constant 0 : index
    %92 = vector.load %arg9[%c0_43, %c0_44, %c0_45] : memref<2x8x8xf32, #tpu.memory_space<vmem>>, vector<1x8x8xf32>
    %93 = vector.shape_cast %92 : vector<1x8x8xf32> to vector<8x8xf32>
    %94 = vector.broadcast %91 : vector<1x8xf32> to vector<8x8xf32>
    %95 = arith.mulf %93, %94 : vector<8x8xf32>
    %cst_46 = arith.constant dense<0.000000e+00> : vector<8xf32>
    %96 = vector.multi_reduction <add>, %95, %cst_46 [1] : vector<8x8xf32> to vector<8xf32>
    %97 = vector.shape_cast %96 : vector<8xf32> to vector<8x1xf32>
    %c0_47 = arith.constant 0 : index
    %c0_48 = arith.constant 0 : index
    %c0_49 = arith.constant 0 : index
    %98 = vector.load %arg10[%c0_47, %c0_48, %c0_49] : memref<2x8x1xf32, #tpu.memory_space<vmem>>, vector<1x8x1xf32>
    %99 = vector.shape_cast %98 : vector<1x8x1xf32> to vector<8x1xf32>
    %100 = arith.addf %97, %99 : vector<8x1xf32>
    %101 = arith.negf %100 : vector<8x1xf32>
    %102 = math.exp %101 : vector<8x1xf32>
    %cst_50 = arith.constant 1.000000e+00 : f32
    %103 = vector.broadcast %cst_50 : f32 to vector<8x1xf32>
    %104 = arith.addf %103, %102 : vector<8x1xf32>
    %105 = arith.divf %103, %104 : vector<8x1xf32>
    %106 = vector.broadcast %105 : vector<8x1xf32> to vector<8x256xf32>
    %107 = arith.mulf %76, %106 : vector<8x256xf32>
    %c0_51 = arith.constant 0 : index
    %c0_52 = arith.constant 0 : index
    %c0_53 = arith.constant 0 : index
    %108 = vector.load %arg11[%c0_51, %c0_52, %c0_53] : memref<2x8x8xf32, #tpu.memory_space<vmem>>, vector<1x8x8xf32>
    %109 = vector.shape_cast %108 : vector<1x8x8xf32> to vector<8x8xf32>
    %cst_54 = arith.constant dense<0.000000e+00> : vector<8x256xf32>
    %110 = tpu.matmul %109, %107, %cst_54 {dimension_numbers = #tpu.dot_dimension_numbers<[1], [0], [0], [1], [0, 0, 1, 1], [], []>} : vector<8x8xf32>, vector<8x256xf32>, vector<8x256xf32> -> vector<8x256xf32>
    %c0_55 = arith.constant 0 : index
    %c0_56 = arith.constant 0 : index
    %c0_57 = arith.constant 0 : index
    %111 = vector.load %arg12[%c0_55, %c0_56, %c0_57] : memref<2x8x1xf32, #tpu.memory_space<vmem>>, vector<1x8x1xf32>
    %112 = vector.shape_cast %111 : vector<1x8x1xf32> to vector<8x1xf32>
    %113 = vector.broadcast %112 : vector<8x1xf32> to vector<8x256xf32>
    %114 = arith.addf %110, %113 : vector<8x256xf32>
    %cst_58 = arith.constant 0.000000e+00 : f32
    %115 = vector.broadcast %cst_58 : f32 to vector<8x256xf32>
    %116 = arith.maximumf %114, %115 : vector<8x256xf32>
    %c0_59 = arith.constant 0 : index
    %c0_60 = arith.constant 0 : index
    %c0_61 = arith.constant 0 : index
    %117 = vector.load %arg13[%c0_59, %c0_60, %c0_61] : memref<2x8x1xf32, #tpu.memory_space<vmem>>, vector<1x8x1xf32>
    %118 = vector.shape_cast %117 : vector<1x8x1xf32> to vector<8x1xf32>
    %119 = vector.broadcast %118 : vector<8x1xf32> to vector<8x256xf32>
    %120 = arith.mulf %119, %116 : vector<8x256xf32>
    %cst_62 = arith.constant dense<0.000000e+00> : vector<256xf32>
    %121 = vector.multi_reduction <add>, %120, %cst_62 [0] : vector<8x256xf32> to vector<256xf32>
    %122 = vector.shape_cast %121 : vector<256xf32> to vector<1x256xf32>
    %c0_63 = arith.constant 0 : index
    %c0_64 = arith.constant 0 : index
    %c0_65 = arith.constant 0 : index
    %123 = vector.load %arg14[%c0_63, %c0_64, %c0_65] : memref<2x1x1xf32, #tpu.memory_space<vmem>>, vector<1x1x1xf32>
    %124 = vector.shape_cast %123 : vector<1x1x1xf32> to vector<1x1xf32>
    %125 = vector.broadcast %124 : vector<1x1xf32> to vector<1x256xf32>
    %126 = arith.addf %122, %125 : vector<1x256xf32>
    %127 = arith.negf %126 : vector<1x256xf32>
    %128 = math.exp %127 : vector<1x256xf32>
    %cst_66 = arith.constant 1.000000e+00 : f32
    %129 = vector.broadcast %cst_66 : f32 to vector<1x256xf32>
    %130 = arith.addf %129, %128 : vector<1x256xf32>
    %131 = arith.divf %129, %130 : vector<1x256xf32>
    %132 = vector.broadcast %131 : vector<1x256xf32> to vector<8x256xf32>
    %133 = arith.mulf %107, %132 : vector<8x256xf32>
    %134 = arith.addf %133, %1 : vector<8x256xf32>
    %c1_67 = arith.constant 1 : index
    %c0_68 = arith.constant 0 : index
    %c0_69 = arith.constant 0 : index
    %135 = vector.load %arg3[%c1_67, %c0_68, %c0_69] : memref<2x8x72xf32, #tpu.memory_space<vmem>>, vector<1x8x72xf32>
    %136 = vector.shape_cast %135 : vector<1x8x72xf32> to vector<8x72xf32>
    %c1_70 = arith.constant 1 : index
    %c0_71 = arith.constant 0 : index
    %c0_72 = arith.constant 0 : index
    %137 = vector.load %arg4[%c1_70, %c0_71, %c0_72] : memref<2x8x1xf32, #tpu.memory_space<vmem>>, vector<1x8x1xf32>
    %138 = vector.shape_cast %137 : vector<1x8x1xf32> to vector<8x1xf32>
    %c17_i32_73 = arith.constant 17 : i32
    %139 = tpu.dynamic_rotate %134 by %c17_i32_73 dim 1 : vector<8x256xf32>, i32 -> vector<8x256xf32>
    %140 = vector.broadcast %2 : vector<1x256xf32> to vector<8x256xf32>
    %141 = arith.mulf %139, %140 : vector<8x256xf32>
    %c16_i32_74 = arith.constant 16 : i32
    %142 = tpu.dynamic_rotate %134 by %c16_i32_74 dim 1 : vector<8x256xf32>, i32 -> vector<8x256xf32>
    %143 = vector.broadcast %3 : vector<1x256xf32> to vector<8x256xf32>
    %144 = arith.mulf %142, %143 : vector<8x256xf32>
    %c15_i32_75 = arith.constant 15 : i32
    %145 = tpu.dynamic_rotate %134 by %c15_i32_75 dim 1 : vector<8x256xf32>, i32 -> vector<8x256xf32>
    %146 = vector.broadcast %4 : vector<1x256xf32> to vector<8x256xf32>
    %147 = arith.mulf %145, %146 : vector<8x256xf32>
    %c1_i32_76 = arith.constant 1 : i32
    %148 = tpu.dynamic_rotate %134 by %c1_i32_76 dim 1 : vector<8x256xf32>, i32 -> vector<8x256xf32>
    %149 = vector.broadcast %5 : vector<1x256xf32> to vector<8x256xf32>
    %150 = arith.mulf %148, %149 : vector<8x256xf32>
    %c255_i32_77 = arith.constant 255 : i32
    %151 = tpu.dynamic_rotate %134 by %c255_i32_77 dim 1 : vector<8x256xf32>, i32 -> vector<8x256xf32>
    %152 = vector.broadcast %6 : vector<1x256xf32> to vector<8x256xf32>
    %153 = arith.mulf %151, %152 : vector<8x256xf32>
    %c241_i32_78 = arith.constant 241 : i32
    %154 = tpu.dynamic_rotate %134 by %c241_i32_78 dim 1 : vector<8x256xf32>, i32 -> vector<8x256xf32>
    %155 = vector.broadcast %7 : vector<1x256xf32> to vector<8x256xf32>
    %156 = arith.mulf %154, %155 : vector<8x256xf32>
    %c240_i32_79 = arith.constant 240 : i32
    %157 = tpu.dynamic_rotate %134 by %c240_i32_79 dim 1 : vector<8x256xf32>, i32 -> vector<8x256xf32>
    %158 = vector.broadcast %8 : vector<1x256xf32> to vector<8x256xf32>
    %159 = arith.mulf %157, %158 : vector<8x256xf32>
    %c239_i32_80 = arith.constant 239 : i32
    %160 = tpu.dynamic_rotate %134 by %c239_i32_80 dim 1 : vector<8x256xf32>, i32 -> vector<8x256xf32>
    %161 = vector.broadcast %9 : vector<1x256xf32> to vector<8x256xf32>
    %162 = arith.mulf %160, %161 : vector<8x256xf32>
    %163 = tpu.concatenate %141, %144, %147, %150, %134, %153, %156, %159, %162 in 0 : vector<8x256xf32>, vector<8x256xf32>, vector<8x256xf32>, vector<8x256xf32>, vector<8x256xf32>, vector<8x256xf32>, vector<8x256xf32>, vector<8x256xf32>, vector<8x256xf32> -> vector<72x256xf32>
    %cst_81 = arith.constant dense<0.000000e+00> : vector<8x256xf32>
    %164 = tpu.matmul %136, %163, %cst_81 {dimension_numbers = #tpu.dot_dimension_numbers<[1], [0], [0], [1], [0, 0, 1, 1], [], []>} : vector<8x72xf32>, vector<72x256xf32>, vector<8x256xf32> -> vector<8x256xf32>
    %165 = vector.broadcast %138 : vector<8x1xf32> to vector<8x256xf32>
    %166 = arith.addf %164, %165 : vector<8x256xf32>
    %cst_82 = arith.constant 0.000000e+00 : f32
    %167 = vector.broadcast %cst_82 : f32 to vector<8x256xf32>
    %168 = arith.maximumf %166, %167 : vector<8x256xf32>
    %169 = arith.addf %168, %134 : vector<8x256xf32>
    %c1_83 = arith.constant 1 : index
    %c0_84 = arith.constant 0 : index
    %c0_85 = arith.constant 0 : index
    %170 = vector.load %arg5[%c1_83, %c0_84, %c0_85] : memref<2x8x72xf32, #tpu.memory_space<vmem>>, vector<1x8x72xf32>
    %171 = vector.shape_cast %170 : vector<1x8x72xf32> to vector<8x72xf32>
    %c1_86 = arith.constant 1 : index
    %c0_87 = arith.constant 0 : index
    %c0_88 = arith.constant 0 : index
    %172 = vector.load %arg6[%c1_86, %c0_87, %c0_88] : memref<2x8x1xf32, #tpu.memory_space<vmem>>, vector<1x8x1xf32>
    %173 = vector.shape_cast %172 : vector<1x8x1xf32> to vector<8x1xf32>
    %c17_i32_89 = arith.constant 17 : i32
    %174 = tpu.dynamic_rotate %169 by %c17_i32_89 dim 1 : vector<8x256xf32>, i32 -> vector<8x256xf32>
    %175 = vector.broadcast %2 : vector<1x256xf32> to vector<8x256xf32>
    %176 = arith.mulf %174, %175 : vector<8x256xf32>
    %c16_i32_90 = arith.constant 16 : i32
    %177 = tpu.dynamic_rotate %169 by %c16_i32_90 dim 1 : vector<8x256xf32>, i32 -> vector<8x256xf32>
    %178 = vector.broadcast %3 : vector<1x256xf32> to vector<8x256xf32>
    %179 = arith.mulf %177, %178 : vector<8x256xf32>
    %c15_i32_91 = arith.constant 15 : i32
    %180 = tpu.dynamic_rotate %169 by %c15_i32_91 dim 1 : vector<8x256xf32>, i32 -> vector<8x256xf32>
    %181 = vector.broadcast %4 : vector<1x256xf32> to vector<8x256xf32>
    %182 = arith.mulf %180, %181 : vector<8x256xf32>
    %c1_i32_92 = arith.constant 1 : i32
    %183 = tpu.dynamic_rotate %169 by %c1_i32_92 dim 1 : vector<8x256xf32>, i32 -> vector<8x256xf32>
    %184 = vector.broadcast %5 : vector<1x256xf32> to vector<8x256xf32>
    %185 = arith.mulf %183, %184 : vector<8x256xf32>
    %c255_i32_93 = arith.constant 255 : i32
    %186 = tpu.dynamic_rotate %169 by %c255_i32_93 dim 1 : vector<8x256xf32>, i32 -> vector<8x256xf32>
    %187 = vector.broadcast %6 : vector<1x256xf32> to vector<8x256xf32>
    %188 = arith.mulf %186, %187 : vector<8x256xf32>
    %c241_i32_94 = arith.constant 241 : i32
    %189 = tpu.dynamic_rotate %169 by %c241_i32_94 dim 1 : vector<8x256xf32>, i32 -> vector<8x256xf32>
    %190 = vector.broadcast %7 : vector<1x256xf32> to vector<8x256xf32>
    %191 = arith.mulf %189, %190 : vector<8x256xf32>
    %c240_i32_95 = arith.constant 240 : i32
    %192 = tpu.dynamic_rotate %169 by %c240_i32_95 dim 1 : vector<8x256xf32>, i32 -> vector<8x256xf32>
    %193 = vector.broadcast %8 : vector<1x256xf32> to vector<8x256xf32>
    %194 = arith.mulf %192, %193 : vector<8x256xf32>
    %c239_i32_96 = arith.constant 239 : i32
    %195 = tpu.dynamic_rotate %169 by %c239_i32_96 dim 1 : vector<8x256xf32>, i32 -> vector<8x256xf32>
    %196 = vector.broadcast %9 : vector<1x256xf32> to vector<8x256xf32>
    %197 = arith.mulf %195, %196 : vector<8x256xf32>
    %198 = tpu.concatenate %176, %179, %182, %185, %169, %188, %191, %194, %197 in 0 : vector<8x256xf32>, vector<8x256xf32>, vector<8x256xf32>, vector<8x256xf32>, vector<8x256xf32>, vector<8x256xf32>, vector<8x256xf32>, vector<8x256xf32>, vector<8x256xf32> -> vector<72x256xf32>
    %cst_97 = arith.constant dense<0.000000e+00> : vector<8x256xf32>
    %199 = tpu.matmul %171, %198, %cst_97 {dimension_numbers = #tpu.dot_dimension_numbers<[1], [0], [0], [1], [0, 0, 1, 1], [], []>} : vector<8x72xf32>, vector<72x256xf32>, vector<8x256xf32> -> vector<8x256xf32>
    %200 = vector.broadcast %173 : vector<8x1xf32> to vector<8x256xf32>
    %201 = arith.addf %199, %200 : vector<8x256xf32>
    %cst_98 = arith.constant dense<0.000000e+00> : vector<8xf32>
    %202 = vector.multi_reduction <add>, %201, %cst_98 [1] : vector<8x256xf32> to vector<8xf32>
    %203 = vector.shape_cast %202 : vector<8xf32> to vector<8x1xf32>
    %cst_99 = arith.constant 2.560000e+02 : f32
    %204 = vector.broadcast %cst_99 : f32 to vector<8x1xf32>
    %205 = arith.divf %203, %204 : vector<8x1xf32>
    %c1_100 = arith.constant 1 : index
    %c0_101 = arith.constant 0 : index
    %c0_102 = arith.constant 0 : index
    %206 = vector.load %arg7[%c1_100, %c0_101, %c0_102] : memref<2x8x8xf32, #tpu.memory_space<vmem>>, vector<1x8x8xf32>
    %207 = vector.shape_cast %206 : vector<1x8x8xf32> to vector<8x8xf32>
    %208 = vector.broadcast %205 : vector<8x1xf32> to vector<8x8xf32>
    %209 = arith.mulf %207, %208 : vector<8x8xf32>
    %cst_103 = arith.constant dense<0.000000e+00> : vector<8xf32>
    %210 = vector.multi_reduction <add>, %209, %cst_103 [0] : vector<8x8xf32> to vector<8xf32>
    %211 = vector.shape_cast %210 : vector<8xf32> to vector<1x8xf32>
    %c1_104 = arith.constant 1 : index
    %c0_105 = arith.constant 0 : index
    %c0_106 = arith.constant 0 : index
    %212 = vector.load %arg8[%c1_104, %c0_105, %c0_106] : memref<2x1x8xf32, #tpu.memory_space<vmem>>, vector<1x1x8xf32>
    %213 = vector.shape_cast %212 : vector<1x1x8xf32> to vector<1x8xf32>
    %214 = arith.addf %211, %213 : vector<1x8xf32>
    %cst_107 = arith.constant 0.000000e+00 : f32
    %215 = vector.broadcast %cst_107 : f32 to vector<1x8xf32>
    %216 = arith.maximumf %214, %215 : vector<1x8xf32>
    %c1_108 = arith.constant 1 : index
    %c0_109 = arith.constant 0 : index
    %c0_110 = arith.constant 0 : index
    %217 = vector.load %arg9[%c1_108, %c0_109, %c0_110] : memref<2x8x8xf32, #tpu.memory_space<vmem>>, vector<1x8x8xf32>
    %218 = vector.shape_cast %217 : vector<1x8x8xf32> to vector<8x8xf32>
    %219 = vector.broadcast %216 : vector<1x8xf32> to vector<8x8xf32>
    %220 = arith.mulf %218, %219 : vector<8x8xf32>
    %cst_111 = arith.constant dense<0.000000e+00> : vector<8xf32>
    %221 = vector.multi_reduction <add>, %220, %cst_111 [1] : vector<8x8xf32> to vector<8xf32>
    %222 = vector.shape_cast %221 : vector<8xf32> to vector<8x1xf32>
    %c1_112 = arith.constant 1 : index
    %c0_113 = arith.constant 0 : index
    %c0_114 = arith.constant 0 : index
    %223 = vector.load %arg10[%c1_112, %c0_113, %c0_114] : memref<2x8x1xf32, #tpu.memory_space<vmem>>, vector<1x8x1xf32>
    %224 = vector.shape_cast %223 : vector<1x8x1xf32> to vector<8x1xf32>
    %225 = arith.addf %222, %224 : vector<8x1xf32>
    %226 = arith.negf %225 : vector<8x1xf32>
    %227 = math.exp %226 : vector<8x1xf32>
    %cst_115 = arith.constant 1.000000e+00 : f32
    %228 = vector.broadcast %cst_115 : f32 to vector<8x1xf32>
    %229 = arith.addf %228, %227 : vector<8x1xf32>
    %230 = arith.divf %228, %229 : vector<8x1xf32>
    %231 = vector.broadcast %230 : vector<8x1xf32> to vector<8x256xf32>
    %232 = arith.mulf %201, %231 : vector<8x256xf32>
    %c1_116 = arith.constant 1 : index
    %c0_117 = arith.constant 0 : index
    %c0_118 = arith.constant 0 : index
    %233 = vector.load %arg11[%c1_116, %c0_117, %c0_118] : memref<2x8x8xf32, #tpu.memory_space<vmem>>, vector<1x8x8xf32>
    %234 = vector.shape_cast %233 : vector<1x8x8xf32> to vector<8x8xf32>
    %cst_119 = arith.constant dense<0.000000e+00> : vector<8x256xf32>
    %235 = tpu.matmul %234, %232, %cst_119 {dimension_numbers = #tpu.dot_dimension_numbers<[1], [0], [0], [1], [0, 0, 1, 1], [], []>} : vector<8x8xf32>, vector<8x256xf32>, vector<8x256xf32> -> vector<8x256xf32>
    %c1_120 = arith.constant 1 : index
    %c0_121 = arith.constant 0 : index
    %c0_122 = arith.constant 0 : index
    %236 = vector.load %arg12[%c1_120, %c0_121, %c0_122] : memref<2x8x1xf32, #tpu.memory_space<vmem>>, vector<1x8x1xf32>
    %237 = vector.shape_cast %236 : vector<1x8x1xf32> to vector<8x1xf32>
    %238 = vector.broadcast %237 : vector<8x1xf32> to vector<8x256xf32>
    %239 = arith.addf %235, %238 : vector<8x256xf32>
    %cst_123 = arith.constant 0.000000e+00 : f32
    %240 = vector.broadcast %cst_123 : f32 to vector<8x256xf32>
    %241 = arith.maximumf %239, %240 : vector<8x256xf32>
    %c1_124 = arith.constant 1 : index
    %c0_125 = arith.constant 0 : index
    %c0_126 = arith.constant 0 : index
    %242 = vector.load %arg13[%c1_124, %c0_125, %c0_126] : memref<2x8x1xf32, #tpu.memory_space<vmem>>, vector<1x8x1xf32>
    %243 = vector.shape_cast %242 : vector<1x8x1xf32> to vector<8x1xf32>
    %244 = vector.broadcast %243 : vector<8x1xf32> to vector<8x256xf32>
    %245 = arith.mulf %244, %241 : vector<8x256xf32>
    %cst_127 = arith.constant dense<0.000000e+00> : vector<256xf32>
    %246 = vector.multi_reduction <add>, %245, %cst_127 [0] : vector<8x256xf32> to vector<256xf32>
    %247 = vector.shape_cast %246 : vector<256xf32> to vector<1x256xf32>
    %c1_128 = arith.constant 1 : index
    %c0_129 = arith.constant 0 : index
    %c0_130 = arith.constant 0 : index
    %248 = vector.load %arg14[%c1_128, %c0_129, %c0_130] : memref<2x1x1xf32, #tpu.memory_space<vmem>>, vector<1x1x1xf32>
    %249 = vector.shape_cast %248 : vector<1x1x1xf32> to vector<1x1xf32>
    %250 = vector.broadcast %249 : vector<1x1xf32> to vector<1x256xf32>
    %251 = arith.addf %247, %250 : vector<1x256xf32>
    %252 = arith.negf %251 : vector<1x256xf32>
    %253 = math.exp %252 : vector<1x256xf32>
    %cst_131 = arith.constant 1.000000e+00 : f32
    %254 = vector.broadcast %cst_131 : f32 to vector<1x256xf32>
    %255 = arith.addf %254, %253 : vector<1x256xf32>
    %256 = arith.divf %254, %255 : vector<1x256xf32>
    %257 = vector.broadcast %256 : vector<1x256xf32> to vector<8x256xf32>
    %258 = arith.mulf %232, %257 : vector<8x256xf32>
    %259 = arith.addf %258, %134 : vector<8x256xf32>
    %c0_132 = arith.constant 0 : index
    %c0_133 = arith.constant 0 : index
    %c0_134 = arith.constant 0 : index
    %260 = vector.load %arg15[%c0_132, %c0_133, %c0_134] : memref<1x8x256xf32, #tpu.memory_space<vmem>>, vector<1x8x256xf32>
    %261 = vector.shape_cast %260 : vector<1x8x256xf32> to vector<8x256xf32>
    %262 = vector.shape_cast %259 : vector<8x256xf32> to vector<1x8x256xf32>
    tpu.vector_store %arg15[%c0_132, %c0_133, %c0_134], %262 {strides = array<i32>} : memref<1x8x256xf32, #tpu.memory_space<vmem>>, vector<1x8x256xf32>,
    return
  }
  func.func @transform_0(%arg0: i32) -> (i32, i32, i32) {
    %c0_i32 = arith.constant 0 : i32
    %c0_i32_0 = arith.constant 0 : i32
    %c0_i32_1 = arith.constant 0 : i32
    return %arg0, %c0_i32, %c0_i32_0 : i32, i32, i32
  }
  func.func @transform_1(%arg0: i32) -> (i32, i32) {
    %c0_i32 = arith.constant 0 : i32
    %c0_i32_0 = arith.constant 0 : i32
    %c0_i32_1 = arith.constant 0 : i32
    return %c0_i32, %c0_i32_0 : i32, i32
  }
  func.func @transform_2(%arg0: i32) -> (i32, i32, i32) {
    %c0_i32 = arith.constant 0 : i32
    %c0_i32_0 = arith.constant 0 : i32
    %c0_i32_1 = arith.constant 0 : i32
    %c0_i32_2 = arith.constant 0 : i32
    return %c0_i32, %c0_i32_0, %c0_i32_1 : i32, i32, i32
  }
  func.func @transform_3(%arg0: i32) -> (i32, i32, i32) {
    %c0_i32 = arith.constant 0 : i32
    %c0_i32_0 = arith.constant 0 : i32
    %c0_i32_1 = arith.constant 0 : i32
    %c0_i32_2 = arith.constant 0 : i32
    return %c0_i32, %c0_i32_0, %c0_i32_1 : i32, i32, i32
  }
  func.func @transform_4(%arg0: i32) -> (i32, i32, i32) {
    %c0_i32 = arith.constant 0 : i32
    %c0_i32_0 = arith.constant 0 : i32
    %c0_i32_1 = arith.constant 0 : i32
    %c0_i32_2 = arith.constant 0 : i32
    return %c0_i32, %c0_i32_0, %c0_i32_1 : i32, i32, i32
  }
  func.func @transform_5(%arg0: i32) -> (i32, i32, i32) {
    %c0_i32 = arith.constant 0 : i32
    %c0_i32_0 = arith.constant 0 : i32
    %c0_i32_1 = arith.constant 0 : i32
    %c0_i32_2 = arith.constant 0 : i32
    return %c0_i32, %c0_i32_0, %c0_i32_1 : i32, i32, i32
  }
  func.func @transform_6(%arg0: i32) -> (i32, i32, i32) {
    %c0_i32 = arith.constant 0 : i32
    %c0_i32_0 = arith.constant 0 : i32
    %c0_i32_1 = arith.constant 0 : i32
    %c0_i32_2 = arith.constant 0 : i32
    return %c0_i32, %c0_i32_0, %c0_i32_1 : i32, i32, i32
  }
  func.func @transform_7(%arg0: i32) -> (i32, i32, i32) {
    %c0_i32 = arith.constant 0 : i32
    %c0_i32_0 = arith.constant 0 : i32
    %c0_i32_1 = arith.constant 0 : i32
    %c0_i32_2 = arith.constant 0 : i32
    return %c0_i32, %c0_i32_0, %c0_i32_1 : i32, i32, i32
  }
  func.func @transform_8(%arg0: i32) -> (i32, i32, i32) {
    %c0_i32 = arith.constant 0 : i32
    %c0_i32_0 = arith.constant 0 : i32
    %c0_i32_1 = arith.constant 0 : i32
    %c0_i32_2 = arith.constant 0 : i32
    return %c0_i32, %c0_i32_0, %c0_i32_1 : i32, i32, i32
  }
  func.func @transform_9(%arg0: i32) -> (i32, i32, i32) {
    %c0_i32 = arith.constant 0 : i32
    %c0_i32_0 = arith.constant 0 : i32
    %c0_i32_1 = arith.constant 0 : i32
    %c0_i32_2 = arith.constant 0 : i32
    return %c0_i32, %c0_i32_0, %c0_i32_1 : i32, i32, i32
  }
  func.func @transform_10(%arg0: i32) -> (i32, i32, i32) {
    %c0_i32 = arith.constant 0 : i32
    %c0_i32_0 = arith.constant 0 : i32
    %c0_i32_1 = arith.constant 0 : i32
    %c0_i32_2 = arith.constant 0 : i32
    return %c0_i32, %c0_i32_0, %c0_i32_1 : i32, i32, i32
  }
  func.func @transform_11(%arg0: i32) -> (i32, i32, i32) {
    %c0_i32 = arith.constant 0 : i32
    %c0_i32_0 = arith.constant 0 : i32
    %c0_i32_1 = arith.constant 0 : i32
    %c0_i32_2 = arith.constant 0 : i32
    return %c0_i32, %c0_i32_0, %c0_i32_1 : i32, i32, i32
  }
  func.func @transform_12(%arg0: i32) -> (i32, i32, i32) {
    %c0_i32 = arith.constant 0 : i32
    %c0_i32_0 = arith.constant 0 : i32
    %c0_i32_1 = arith.constant 0 : i32
    %c0_i32_2 = arith.constant 0 : i32
    return %c0_i32, %c0_i32_0, %c0_i32_1 : i32, i32, i32
  }
  func.func @transform_13(%arg0: i32) -> (i32, i32, i32) {
    %c0_i32 = arith.constant 0 : i32
    %c0_i32_0 = arith.constant 0 : i32
    %c0_i32_1 = arith.constant 0 : i32
    %c0_i32_2 = arith.constant 0 : i32
    return %c0_i32, %c0_i32_0, %c0_i32_1 : i32, i32, i32
  }
  func.func @transform_14(%arg0: i32) -> (i32, i32, i32) {
    %c0_i32 = arith.constant 0 : i32
    %c0_i32_0 = arith.constant 0 : i32
    %c0_i32_1 = arith.constant 0 : i32
    return %arg0, %c0_i32, %c0_i32_0 : i32, i32, i32
  }
}

</mosaic_0001>

<bundles_post_ra>
// kernel: tpu_custom_call.1
= control target key start
LH: loop header
LB: loop body
LE: loop exit
PB: predicated region body
PF: predicated region fallthrough
CT: control target
= control target key end

     0   :  { %s2614_s0 = inlined_call_operand.vmem [shape: f32[2,8,256], index: 0, kind: input, shape index: {}]   ;;  %s2615_s1 = inlined_call_operand.vmem [shape: f32[9,256], index: 1, kind: input, shape index: {}]   ;;  %s2616_s2 = inlined_call_operand.vmem [shape: f32[2,8,72], index: 2, kind: input, shape index: {}]   ;;  %s2617_s3 = inlined_call_operand.vmem [shape: f32[2,8,1], index: 3, kind: input, shape index: {}]   ;;  %s2618_s4 = inlined_call_operand.hbm [shape: f32[2,8,72], index: 4, kind: input, shape index: {}]   ;;  %s2619_s5 = inlined_call_operand.vmem [shape: f32[2,8,1], index: 5, kind: input, shape index: {}]   ;;  %s2620_s6 = inlined_call_operand.hbm [shape: f32[2,8,8], index: 6, kind: input, shape index: {}]   ;;  %s2621_s7 = inlined_call_operand.vmem [shape: f32[2,1,8], index: 7, kind: input, shape index: {}]   ;;  %s2622_s8 = inlined_call_operand.hbm [shape: f32[2,8,8], index: 8, kind: input, shape index: {}]   ;;  %s2623_s9 = inlined_call_operand.vmem [shape: f32[2,8,1], index: 9, kind: input, shape index: {}]   ;;  %s2624_s10 = inlined_call_operand.hbm [shape: f32[2,8,8], index: 10, kind: input, shape index: {}]   ;;  %s2625_s11 = inlined_call_operand.vmem [shape: f32[2,8,1], index: 11, kind: input, shape index: {}]   ;;  %s2626_s12 = inlined_call_operand.vmem [shape: f32[2,8,1], index: 12, kind: input, shape index: {}]   ;;  %s2627_s13 = inlined_call_operand.vmem [shape: f32[2,1,1], index: 13, kind: input, shape index: {}]   ;;  %s2628_s14 = inlined_call_operand.hbm [shape: f32[2,8,256], index: 14, kind: output, shape index: {}]  }
   0x1   :  { %2640 = sst [smem:[#allocation22_spill]] %s2618_s4 }
   0x2   :  { %2641 = sst [smem:[#allocation23_spill]] %s2620_s6 }
   0x3   :  { %2642 = sst [smem:[#allocation24_spill]] %s2628_s14 }
   0x4   :  { %19 = vsyncpa [#allocation3], 0 }
   0x5   :  { %20 = vsyncpa [#allocation6], 0 }
   0x6   :  { %21 = vsyncpa [#allocation9], 0 }
   0x7   :  { %22 = vsyncpa [#allocation4], 0 }
   0x8   :  { %24 = vsyncpa [#allocation4 + $0x1], 0  ;;  %s2012_s29 = smov 0   ;;  %s2014_s30 = smov 0  }
   0x9   :  { %s2016_s15 = smov 0   ;;  %s2018_s16 = smov 0  }
   0xa LB: > { %2643 = sst [smem:[#allocation15_spill]] %s1907_s29  ;;  %s2033_s17 = sadd.s32 4294967295, %s1919_s16   ;;  %s1919_s16 = sphi %s2018_s16, %s2669_s16   ;;  %s1915_s15 = sphi %s2016_s15, %s2671_s15   ;;  %s1911_s30 = sphi %s2014_s30, %s2673_s30   ;;  %s1907_s29 = sphi %s2012_s29, %s2672_s29  }
   0xb   : > { %2644 = sst [smem:[#allocation16_spill]] %s1915_s15  ;;  %s1550_s18 = sadd.s32 4294967294, %s1919_s16  }
   0xc   : > { %2645 = sst [smem:[#allocation17_spill]] %s1919_s16  ;;  %s2037_s19 = sadd.s32 1, %s1919_s16  }
   0xd   : > { %2646 = sst [smem:[#allocation18_spill]] %s2037_s19  ;;  %s336_s20 = sadd.s32 1, %s1915_s15 }
   0xe   : > { %s333_s21 = ssub.s32 %s1919_s16, %s2037_s19  ;;  %p346_p0 = scmp.ne.s32.totalorder %s1915_s15, %s1911_s30 }
   0xf   : > { %p334_p1 = scmp.eq.s32.totalorder %s333_s21, 0  ;;  %p347_p2 = scmp.eq.s32.totalorder %s2033_s17, 1 }
  0x10   : > { %p352_p3 = scmp.ne.s32.totalorder %s1911_s30, %s1907_s29  ;;  %p353_p4 = scmp.eq.s32.totalorder %s1550_s18, 1 }
  0x11   : > { %s2048_s22 = scalar_select %p334_p1, %s1915_s15, %s336_s20  }
  0x12   : > { %p2050_p5 = por %p347_p2, %p346_p0  ;;  %p2054_p6 = por %p353_p4, %p352_p3 }
  0x13   : > { %2647 = sst [smem:[#allocation19_spill]] %s2048_s22  ;;  %p1551_p7 = scmp.ge.s32.totalorder %s1919_s16, 1 }
  0x14   : > { %s2648_s23 = scalar_select %p2050_p5, 1, 0 }
  0x15   : > { %s2650_s24 = scalar_select %p2054_p6, 1, 0 }
  0x16   : > { %2649 = sst [smem:[#allocation20_spill]] %s2648_s23  ;;  %p360_p8 = scmp.lt.s32.totalorder %s1919_s16, 3 }
  0x17   : > { %2651 = sst [smem:[#allocation21_spill]] %s2650_s24  ;;  %p1640_p9 = scmp.eq.s32.totalorder %s2033_s17, 0 }
  0x18   : > { %p2061_p10 = pnand %p1551_p7, %p360_p8  ;;  %s2653_s6 = sld [smem:[#allocation23_spill]] }
  0x19   : > { %s2654_s4 = sld [smem:[#allocation22_spill]]  ;;  %s1921_s15 = smov [#allocation5]  }
  0x1a   : > { %p1623_p11 = pneg %p2061_p10  ;;  %s399_s19 = sshll.u32 %s1921_s15, 4  ;;  %s400_s19 = int_to_ptr.vmem [resolvable:$true] %s399_s19 }
  0x1b   : > { %s1922_s26 = smov 128   ;;  %s1923_s27 = smov 8  }
  0x1c   : > { %p2075_p12 = pnand %p1640_p9, %p1623_p11  ;;  %s414_s24 = sshll.u32 %s2622_s8, 4  ;;  %s415_s24 = int_to_ptr.hbm [resolvable:$true] %s414_s24 }
  0x1d   : > { %s431_s16 = sshll.u32 %s2624_s10, 4  ;;  %s1925_s23 = smov [#allocation7]   ;;  %s432_s16 = int_to_ptr.hbm [resolvable:$true] %s431_s16 }
  0x1e   : > { %s397_s28 = sshll.u32 %s2653_s6, 4  ;;  %s1924_s6 = smov [#allocation2]   ;;  %s398_s28 = int_to_ptr.hbm [resolvable:$true] %s397_s28 }
  0x1f   : > { %s380_s21 = sshll.u32 %s2654_s4, 4  ;;  %s382_s18 = sshll.u32 %s1924_s6, 4  ;;  %s381_s21 = int_to_ptr.hbm [resolvable:$true] %s380_s21  ;;  %s383_s18 = int_to_ptr.vmem [resolvable:$true] %s382_s18 }
  0x20   : > { %1629 = dma.hbm_to_vmem [thread:$0]  (!%p2075_p12), %s398_s28, 256, %s400_s19, [#allocation6], %s1922_s26, %s1922_s26, %s1923_s27  }
  0x21   : > { %1626 = dma.hbm_to_vmem [thread:$0]  (!%p2075_p12), %s381_s21, 256, %s383_s18, [#allocation3], %s1922_s26, %s1922_s26, %s1923_s27  }
  0x22   : > { %s416_s14 = sshll.u32 %s1925_s23, 4  ;;  %s1926_s19 = smov [#allocation8]   ;;  %s417_s14 = int_to_ptr.vmem [resolvable:$true] %s416_s14 }
  0x23   : > { %1632 = dma.hbm_to_vmem [thread:$0]  (!%p2075_p12), %s415_s24, 256, %s417_s14, [#allocation6], %s1922_s26, %s1922_s26, %s1923_s27  }
  0x24   : > { %s433_s6 = sshll.u32 %s1926_s19, 4  ;;  %466 = sbr.rel (%p2061_p10) target bundleno = 2395 (0x95b), region = 76  ;;  %s434_s6 = int_to_ptr.vmem [resolvable:$true] %s433_s6 }
  0x25   : > { %1635 = dma.hbm_to_vmem [thread:$0]  (!%p2075_p12), %s432_s16, 256, %s434_s6, [#allocation9], %s1922_s26, %s1922_s26, %s1923_s27  }
  0x29   : > { %1890 = dma.done.wait (%p1640_p9), [#allocation3], 256  }
  0x2a   : > { %1892 = vsyncadd (%p1640_p9), [#allocation3], 4294967040 }
  0x2b   : > { %1894 = dma.done.wait (%p1640_p9), [#allocation6], 512  }
  0x2c   : > { %1896 = vsyncadd (%p1640_p9), [#allocation6], 4294966784 }
  0x2d   : > { %1898 = dma.done.wait (%p1640_p9), [#allocation9], 256  }
  0x2e   : > { %1900 = vsyncadd (%p1640_p9), [#allocation9], 4294967040  ;;  %p528_p13 = scmp.lt.s32.totalorder %s2033_s17, 1  ;;  %s1927_s23 = smov 112   ;;  %v556_v3 = vlaneseq  ;;  %v551_v35 = vld [vmem:[%s2617_s3] sm:$0xff]  ;;  %v1935_v36 = vmov 0  }
  0x2f   : > { %s1928_s24 = smov 111   ;;  %s1929_s25 = smov 113   ;;  %v1571_v7 = vld [vmem:[%s2615_s1 + $0x10] ss:$8 sm:$0x3]  ;;  %1697 = vset.pattern.permute.xlu1 %v1935_v36  ;;  %1698 = vset.pattern.permute.xlu0 %v1935_v36  ;;  %vm2639_vm8 = vcmask 588800  }
  0x30   : > { %s529_s4 = scalar_select %p528_p13, %s2033_s17, 1  ;;  %v2148_v6 = vand.u32 127, %v556_v3  ;;  %v1570_v9 = vld [vmem:[%s2615_s1 + $0x7] ss:$8 sm:$0x3]  ;;  %v2158_v10 = vperm.slane %v1571_v7, 0 }
  0x31   : > { %s1930_s28 = smov 127   ;;  %s1931_s21 = smov 1   ;;  %v2160_v11 = vperm.slane %v1571_v7, 1  ;;  %v1569_v12 = vld [vmem:[%s2615_s1 + $0x6] ss:$8 sm:$0x3] }
  0x32   : > { %s1603_s14 = sshll.u32 %s529_s4, 4  ;;  %s1932_s26 = smov 15   ;;  %vm642_vm0 = vcmp.lt.s32.totalorder %v2148_v6, 112  ;;  %vm656_vm1 = vcmp.lt.s32.totalorder %v2148_v6, 111  ;;  %vm628_vm2 = vcmp.lt.s32.totalorder %v2148_v6, 113  ;;  %v2166_v15 = vperm.slane %v1570_v9, 0 }
  0x33   : > { %s532_s22 = scalar_lea.vmem %s2614_s0, %s1603_s14  ;;  %s1933_s27 = smov 16   ;;  %v2168_v16 = vperm.slane %v1570_v9, 1  ;;  %v2180_v23 = vperm.slane %v1569_v12, 0  ;;  %v2182_v24 = vperm.slane %v1569_v12, 1  ;;  %vm614_vm3 = vcmp.lt.s32.totalorder %v2148_v6, 127 }
  0x34   : > { %v2112_v0 = vld [vmem:[%s532_s22] sm:$0xff]  ;;  %v2120_v1 = vld [vmem:[%s532_s22 + $0x8] sm:$0xff]  ;;  %s1934_s18 = smov 17   ;;  %vm600_vm4 = vcmp.lt.s32.totalorder %v2148_v6, 1  ;;  %vm586_vm5 = vcmp.lt.s32.totalorder %v2148_v6, 15  ;;  %vm572_vm6 = vcmp.lt.s32.totalorder %v2148_v6, 16 }
  0x35   : > { %638 = vrot.lane.b32.xlu1 %v2112_v0, %s1927_s23  ;;  %652 = vrot.lane.b32.xlu0 %v2112_v0, %s1928_s24  ;;  %v1568_v27 = vld [vmem:[%s2615_s1 + $0x5] ss:$8 sm:$0x3]  ;;  %v1567_v43 = vld [vmem:[%s2615_s1 + $0x3] ss:$8 sm:$0x3] }
  0x36   : > { %624 = vrot.lane.b32.xlu2 %v2112_v0, %s1929_s25  ;;  %v2196_v33 = vperm.slane %v1568_v27, 0  ;;  %v2198_v34 = vperm.slane %v1568_v27, 1  ;;  %v1566_v44 = vld [vmem:[%s2615_s1 + $0x2] ss:$8 sm:$0x3]  ;;  %v2216_v45 = vperm.slane %v1567_v43, 0 }
  0x37   : > { %v2220_v46 = vperm.slane %v1567_v43, 1  ;;  %v2223_v48 = vperm.slane %v1566_v44, 0  ;;  %v2225_v49 = vperm.slane %v1566_v44, 1  ;;  %v1565_v60 = vld [vmem:[%s2615_s1 + $0x1] ss:$8 sm:$0x3] }
  0x38   : > { %v2243_v61 = vperm.slane %v1565_v60, 0  ;;  %v2245_v62 = vperm.slane %v1565_v60, 1  ;;  %vm558_vm7 = vcmp.lt.s32.totalorder %v2148_v6, 17  ;;  %vm2638_vm10 = vcmask 64512   ;;  %s525_s4 = sand.u32 1, %s1911_s30   ;;  %s1604_s29 = sshll.u32 %s2033_s17, 4 }
  0x39   : > { %s1562_s14 = sshll.u32 %s525_s4, 4 }
  0x3d   : > { %640 = vrot.lane.b32.xlu1 %v2120_v1, %s1927_s23  ;;  %654 = vrot.lane.b32.xlu0 %v2120_v1, %s1928_s24 }
  0x3e   : > { %626 = vrot.lane.b32.xlu2 %v2120_v1, %s1929_s25 }
  0x45   : > { %612 = vrot.lane.b32.xlu1 %v2120_v1, %s1930_s28  ;;  %610 = vrot.lane.b32.xlu0 %v2112_v0, %s1930_s28 }
  0x46   : > { %596 = vrot.lane.b32.xlu2 %v2112_v0, %s1931_s21 }
  0x4d   : > { %582 = vrot.lane.b32.xlu1 %v2112_v0, %s1932_s26  ;;  %598 = vrot.lane.b32.xlu0 %v2120_v1, %s1931_s21 }
  0x4e   : > { %584 = vrot.lane.b32.xlu2 %v2120_v1, %s1932_s26 }
  0x55   : > { %570 = vrot.lane.b32.xlu1 %v2120_v1, %s1933_s27  ;;  %568 = vrot.lane.b32.xlu0 %v2112_v0, %s1933_s27 }
  0x56   : > { %552 = vrot.lane.b32.xlu2 %v2112_v0, %s1934_s18 }
  0x5d   : > { %554 = vrot.lane.b32.xlu0 %v2120_v1, %s1934_s18  ;;  %668 = vperm.xlu1 %1697, %v551_v35  }
  0x90   : > { %v625_v2 = vpop.permute.xlu2 %624 }
  0x98   : > { %v627_v8 = vpop.permute.xlu2 %626 }
  0x99   : > { %v629_v25 = vsel %vm628_vm2, %v625_v2, %v627_v8  ;;  %v630_v26 = vsel %vm628_vm2, %v627_v8, %v625_v2  ;;  %v535_v8 = vld [vmem:[%s2615_s1] ss:$8 sm:$0x3] }
  0x9a   : > { %v636_v31 = vmul.f32 %v2180_v23, %v629_v25  ;;  %v637_v32 = vmul.f32 %v2182_v24, %v630_v26  ;;  %v2257_v12 = vperm.slane %v535_v8, 0 }
  0xa0   : > { %v597_v30 = vpop.permute.xlu2 %596 }
  0xa7   : > { %v639_v4 = vpop.permute.xlu1 %638  ;;  %v653_v5 = vpop.permute.xlu0 %652 }
  0xa8   : > { %v585_v47 = vpop.permute.xlu2 %584 }
  0xaf   : > { %v641_v13 = vpop.permute.xlu1 %640  ;;  %v655_v14 = vpop.permute.xlu0 %654 }
  0xb0   : > { %v643_v17 = vsel %vm642_vm0, %v639_v4, %v641_v13  ;;  %v644_v18 = vsel %vm642_vm0, %v641_v13, %v639_v4  ;;  %v657_v19 = vsel %vm656_vm1, %v653_v5, %v655_v14  ;;  %v658_v20 = vsel %vm656_vm1, %v655_v14, %v653_v5  ;;  %v553_v9 = vpop.permute.xlu2 %552 }
  0xb1   : > { %v664_v21 = vmul.f32 %v2158_v10, %v657_v19  ;;  %v665_v22 = vmul.f32 %v2160_v11, %v658_v20  ;;  %v650_v28 = vmul.f32 %v2166_v15, %v643_v17  ;;  %v651_v29 = vmul.f32 %v2168_v16, %v644_v18 }
  0xb2   : > { %v2259_v13 = vperm.slane %v535_v8, 1 }
  0xb3   : > { %682 = vmatpush.msra.mxu0 %v664_v21  ;;  %702 = vmatpush.msra.mxu1 %v665_v22  ;;  %v550_v21 = vld [vmem:[%s2616_s2] sm:$0xff] }
  0xb5   : > { %683 = vmatpush.msra.mxu0 %v650_v28  ;;  %703 = vmatpush.msra.mxu1 %v651_v29 }
  0xb7   : > { %v613_v37 = vpop.permute.xlu1 %612  ;;  %684 = vmatpush.msra.mxu0 %v636_v31  ;;  %704 = vmatpush.msra.mxu1 %v637_v32  ;;  %v611_v38 = vpop.permute.xlu0 %610 }
  0xb8   : > { %v615_v39 = vsel %vm614_vm3, %v611_v38, %v613_v37  ;;  %v616_v40 = vsel %vm614_vm3, %v613_v37, %v611_v38 }
  0xb9   : > { %v622_v41 = vmul.f32 %v2196_v33, %v615_v39  ;;  %v623_v42 = vmul.f32 %v2198_v34, %v616_v40 }
  0xbb   : > { %685 = vmatpush.msra.mxu0 %v622_v41  ;;  %705 = vmatpush.msra.mxu1 %v623_v42 }
  0xbd   : > { %686 = vmatpush.msra.mxu0 %v2112_v0  ;;  %706 = vmatpush.msra.mxu1 %v2120_v1 }
  0xbf   : > { %v583_v50 = vpop.permute.xlu1 %582  ;;  %v599_v51 = vpop.permute.xlu0 %598 }
  0xc0   : > { %v601_v52 = vsel %vm600_vm4, %v597_v30, %v599_v51  ;;  %v602_v53 = vsel %vm600_vm4, %v599_v51, %v597_v30  ;;  %v587_v54 = vsel %vm586_vm5, %v583_v50, %v585_v47  ;;  %v588_v55 = vsel %vm586_vm5, %v585_v47, %v583_v50 }
  0xc1   : > { %v608_v56 = vmul.f32 %v2216_v45, %v602_v53  ;;  %v609_v57 = vmul.f32 %v2220_v46, %v601_v52  ;;  %v594_v58 = vmul.f32 %v2223_v48, %v588_v55  ;;  %v595_v59 = vmul.f32 %v2225_v49, %v587_v54  ;;  %v720_v53 = vld [vmem:[%s2619_s5] sm:$0xff] }
  0xc3   : > { %687 = vmatpush.msra.mxu0 %v608_v56  ;;  %707 = vmatpush.msra.mxu1 %v609_v57 }
  0xc5   : > { %688 = vmatpush.msra.mxu0 %v594_v58  ;;  %708 = vmatpush.msra.mxu1 %v595_v59 }
  0xc7   : > { %v571_v63 = vpop.permute.xlu1 %570  ;;  %v569_v2 = vpop.permute.xlu0 %568 }
  0xc8   : > { %v573_v3 = vsel %vm572_vm6, %v569_v2, %v571_v63  ;;  %v574_v4 = vsel %vm572_vm6, %v571_v63, %v569_v2 }
  0xc9   : > { %v580_v5 = vmul.f32 %v2243_v61, %v574_v4  ;;  %v581_v7 = vmul.f32 %v2245_v62, %v573_v3 }
  0xcb   : > { %689 = vmatpush.msra.mxu0 %v580_v5  ;;  %709 = vmatpush.msra.mxu1 %v581_v7 }
  0xcf   : > { %v555_v14 = vpop.permute.xlu0 %554  ;;  %v669_v22 = vpop.permute.xlu1 %668 }
  0xd0   : > { %v559_v17 = vsel %vm558_vm7, %v553_v9, %v555_v14  ;;  %v560_v18 = vsel %vm558_vm7, %v555_v14, %v553_v9 }
  0xd1   : > { %v566_v19 = vmul.f32 %v2257_v12, %v560_v18  ;;  %v567_v20 = vmul.f32 %v2259_v13, %v559_v17 }
  0xd3   : > { %690 = vmatpush.msra.mxu0 %v566_v19  ;;  %710 = vmatpush.msra.mxu1 %v567_v20 }
  0xd4   : > { %1572 = vmatmul.msk.f32.vlgmr.msra.gmra.mxu0 %vm2639_vm8, %v550_v21  ;;  %1573 = vmatmul.msk.f32.vlgmr.msra.gmra.mxu1 %vm2639_vm8, %v550_v21 }
 0x151   : > { %v692_v25 = vpop.f32.mrf.mxu0  ;;  %v712_v26 = vpop.f32.mrf.mxu1 }
 0x152   : > { %v693_v27 = vadd.f32 %v692_v25, %v669_v22  ;;  %v713_v28 = vadd.f32 %v712_v26, %v669_v22 }
 0x154   : > { %v715_v29 = vmax.f32 %v693_v27, 0.0  ;;  %v716_v30 = vmax.f32 %v713_v28, 0.0 }
 0x156   : > { %v717_v31 = vadd.f32 %v715_v29, %v2112_v0  ;;  %v718_v32 = vadd.f32 %v716_v30, %v2120_v1 }
 0x158   : > { %769 = vrot.lane.b32.xlu1 %v717_v31, %s1927_s23  ;;  %777 = vrot.lane.b32.xlu2 %v717_v31, %s1928_s24 }
 0x159   : > { %779 = vrot.lane.b32.xlu0 %v718_v32, %s1928_s24 }
 0x160   : > { %763 = vrot.lane.b32.xlu1 %v718_v32, %s1929_s25  ;;  %771 = vrot.lane.b32.xlu2 %v718_v32, %s1927_s23 }
 0x161   : > { %761 = vrot.lane.b32.xlu0 %v717_v31, %s1929_s25 }
 0x168   : > { %745 = vrot.lane.b32.xlu1 %v717_v31, %s1931_s21  ;;  %753 = vrot.lane.b32.xlu2 %v717_v31, %s1930_s28 }
 0x169   : > { %755 = vrot.lane.b32.xlu0 %v718_v32, %s1930_s28 }
 0x170   : > { %739 = vrot.lane.b32.xlu1 %v718_v32, %s1932_s26  ;;  %747 = vrot.lane.b32.xlu2 %v718_v32, %s1931_s21 }
 0x171   : > { %737 = vrot.lane.b32.xlu0 %v717_v31, %s1932_s26 }
 0x178   : > { %721 = vrot.lane.b32.xlu1 %v717_v31, %s1934_s18  ;;  %729 = vrot.lane.b32.xlu2 %v717_v31, %s1933_s27 }
 0x179   : > { %731 = vrot.lane.b32.xlu0 %v718_v32, %s1933_s27 }
 0x180   : > { %723 = vrot.lane.b32.xlu2 %v718_v32, %s1934_s18 }
 0x181   : > { %787 = vperm.xlu0 %1698, %v720_v53  }
 0x1b2   : > { %v778_v35 = vpop.permute.xlu2 %777 }
 0x1ba   : > { %v772_v36 = vpop.permute.xlu2 %771 }
 0x1c2   : > { %v754_v43 = vpop.permute.xlu2 %753 }
 0x1ca   : > { %v770_v37 = vpop.permute.xlu1 %769  ;;  %v748_v59 = vpop.permute.xlu2 %747 }
 0x1cb   : > { %v780_v38 = vpop.permute.xlu0 %779  ;;  %v773_v39 = vsel %vm642_vm0, %v770_v37, %v772_v36  ;;  %v774_v40 = vsel %vm642_vm0, %v772_v36, %v770_v37 }
 0x1cc   : > { %v781_v41 = vsel %vm656_vm1, %v778_v35, %v780_v38  ;;  %v782_v42 = vsel %vm656_vm1, %v780_v38, %v778_v35  ;;  %v775_v50 = vmul.f32 %v773_v39, %v2166_v15  ;;  %v776_v51 = vmul.f32 %v774_v40, %v2168_v16  ;;  %v719_v39 = vld [vmem:[#allocation2] sm:$0xff] }
 0x1cd   : > { %v783_v44 = vmul.f32 %v781_v41, %v2158_v10  ;;  %v784_v47 = vmul.f32 %v782_v42, %v2160_v11 }
 0x1cf   : > { %800 = vmatpush.msra.mxu2 %v783_v44  ;;  %820 = vmatpush.msra.mxu3 %v784_v47 }
 0x1d1   : > { %801 = vmatpush.msra.mxu2 %v775_v50  ;;  %821 = vmatpush.msra.mxu3 %v776_v51  ;;  %v1936_v50 = vmov 256.0  }
 0x1d2   : > { %v764_v52 = vpop.permute.xlu1 %763  ;;  %v730_v9 = vpop.permute.xlu2 %729  ;;  %1699 = vrcp.f32 %v1936_v50  ;;  %v963_v50 = vld [vmem:[%s2627_s13] sm:$0x1] }
 0x1d3   : > { %v762_v54 = vpop.permute.xlu0 %761 }
 0x1d4   : > { %v765_v55 = vsel %vm628_vm2, %v762_v54, %v764_v52  ;;  %v766_v56 = vsel %vm628_vm2, %v764_v52, %v762_v54 }
 0x1d5   : > { %v767_v57 = vmul.f32 %v765_v55, %v2180_v23  ;;  %v768_v58 = vmul.f32 %v766_v56, %v2182_v24 }
 0x1d7   : > { %802 = vmatpush.msra.mxu2 %v767_v57  ;;  %822 = vmatpush.msra.mxu3 %v768_v58  ;;  %v844_v57 = vld [vmem:[#allocation5] sm:$0xff] }
 0x1d8   : > { %v1700_v51 = vpop.eup %1699 }
 0x1d9   : > { %v837_v52 = vmul.f32 256.0, %v1700_v51  ;;  %vm841_vm9 = vweird.f32 %v1700_v51 }
 0x1da   : > { %v746_v60 = vpop.permute.xlu1 %745  ;;  %v724_v27 = vpop.permute.xlu2 %723 }
 0x1db   : > { %v756_v63 = vpop.permute.xlu0 %755  ;;  %v749_v7 = vsel %vm600_vm4, %v746_v60, %v748_v59  ;;  %v750_v8 = vsel %vm600_vm4, %v748_v59, %v746_v60  ;;  %v838_v53 = vsub.f32 1.0, %v837_v52 }
 0x1dc   : > { %v757_v2 = vsel %vm614_vm3, %v754_v43, %v756_v63  ;;  %v758_v3 = vsel %vm614_vm3, %v756_v63, %v754_v43  ;;  %v751_v14 = vmul.f32 %v750_v8, %v2216_v45  ;;  %v752_v17 = vmul.f32 %v749_v7, %v2220_v46  ;;  %v854_v8 = vld [vmem:[%s2621_s7] sm:$0x1] }
 0x1dd   : > { %v759_v4 = vmul.f32 %v757_v2, %v2196_v33  ;;  %v760_v5 = vmul.f32 %v758_v3, %v2198_v34  ;;  %v839_v54 = vmul.f32 %v1700_v51, %v838_v53 }
 0x1df   : > { %803 = vmatpush.msra.mxu2 %v759_v4  ;;  %823 = vmatpush.msra.mxu3 %v760_v5  ;;  %v840_v55 = vadd.f32 %v1700_v51, %v839_v54  ;;  %v891_v54 = vld [vmem:[#allocation8] sm:$0xff] }
 0x1e1   : > { %804 = vmatpush.msra.mxu2 %v717_v31  ;;  %824 = vmatpush.msra.mxu3 %v718_v32  ;;  %v2349_v56 = vsel %vm841_vm9, %v1700_v51, %v840_v55 }
 0x1e2   : > { %v740_v18 = vpop.permute.xlu1 %739 }
 0x1e3   : > { %805 = vmatpush.msra.mxu2 %v751_v14  ;;  %825 = vmatpush.msra.mxu3 %v752_v17  ;;  %v738_v19 = vpop.permute.xlu0 %737 }
 0x1e4   : > { %v741_v20 = vsel %vm586_vm5, %v738_v19, %v740_v18  ;;  %v742_v21 = vsel %vm586_vm5, %v740_v18, %v738_v19  ;;  %v857_v18 = vld [vmem:[#allocation7] sm:$0xff] }
 0x1e5   : > { %v743_v22 = vmul.f32 %v742_v21, %v2223_v48  ;;  %v744_v25 = vmul.f32 %v741_v20, %v2225_v49 }
 0x1e7   : > { %806 = vmatpush.msra.mxu2 %v743_v22  ;;  %826 = vmatpush.msra.mxu3 %v744_v25  ;;  %v863_v22 = vld [vmem:[%s2623_s9] sm:$0xff] }
 0x1ea   : > { %v722_v26 = vpop.permute.xlu1 %721 }
 0x1eb   : > { %v732_v28 = vpop.permute.xlu0 %731  ;;  %v725_v29 = vsel %vm558_vm7, %v722_v26, %v724_v27  ;;  %v726_v30 = vsel %vm558_vm7, %v724_v27, %v722_v26 }
 0x1ec   : > { %v733_v31 = vsel %vm572_vm6, %v730_v9, %v732_v28  ;;  %v734_v32 = vsel %vm572_vm6, %v732_v28, %v730_v9  ;;  %v727_v37 = vmul.f32 %v726_v30, %v2257_v12  ;;  %v728_v38 = vmul.f32 %v725_v29, %v2259_v13 }
 0x1ed   : > { %v735_v35 = vmul.f32 %v734_v32, %v2243_v61  ;;  %v736_v36 = vmul.f32 %v733_v31, %v2245_v62 }
 0x1ef   : > { %807 = vmatpush.msra.mxu2 %v735_v35  ;;  %827 = vmatpush.msra.mxu3 %v736_v36 }
 0x1f1   : > { %808 = vmatpush.msra.mxu2 %v727_v37  ;;  %828 = vmatpush.msra.mxu3 %v728_v38 }
 0x1f2   : > { %1574 = vmatmul.msk.f32.vlgmr.msra.gmra.mxu2 %vm2639_vm8, %v719_v39  ;;  %1575 = vmatmul.msk.f32.vlgmr.msra.gmra.mxu3 %vm2639_vm8, %v719_v39 }
 0x1f3   : > { %v788_v40 = vpop.permute.xlu0 %787 }
 0x275   : > { %v810_v41 = vpop.f32.mrf.mxu2  ;;  %v830_v42 = vpop.f32.mrf.mxu3 }
 0x276   : > { %v2343_v43 = vadd.f32 %v810_v41, %v788_v40  ;;  %v2345_v44 = vadd.f32 %v830_v42, %v788_v40  ;;  %v892_v42 = vld [vmem:[%s2625_s11] sm:$0xff] }
 0x278   : > { %v833_v47 = vadd.f32 %v2345_v44, %v2343_v43 }
 0x27a   : > { %834 = vadd.xlane.f32.xlu1 %v833_v47  ;;  %v943_v47 = vld [vmem:[%s2626_s12] sm:$0xff] }
 0x2ed   : > { %v835_v58 = vpop.xlane.xlu1 %834 }
 0x2ee   : > { %v843_v59 = vmul.f32 %v2349_v56, %v835_v58 }
 0x2f0   : > { %v845_v60 = vmul.f32 %v844_v57, %v843_v59 }
 0x2f2   : > { %v847_v63 = vsel %vm2638_vm10, %v845_v60, 0.0 }
 0x2f3   : > { %v848_v2 = vrot.slane %v847_v63, 4 }
 0x2f5   : > { %v849_v3 = vadd.f32 %v848_v2, %v847_v63 }
 0x2f7   : > { %v850_v4 = vrot.slane %v849_v3, 2 }
 0x2f9   : > { %v851_v5 = vadd.f32 %v850_v4, %v849_v3 }
 0x2fb   : > { %v852_v7 = vrot.slane %v851_v5, 1 }
 0x2fd   : > { %v853_v9 = vadd.f32 %v852_v7, %v851_v5 }
 0x2ff   : > { %v855_v14 = vadd.f32 %v854_v8, %v853_v9 }
 0x301   : > { %v856_v17 = vmax.f32 %v855_v14, 0.0 }
 0x303   : > { %v858_v19 = vperm.slane %v856_v17, 0 }
 0x305   : > { %v859_v20 = vmul.f32 %v858_v19, %v857_v18 }
 0x307   : > { %v860_v21 = vsel %vm2638_vm10, %v859_v20, 0.0 }
 0x308   : > { %861 = vadd.xlane.f32.xlu2 %v860_v21 }
 0x37b   : > { %v862_v25 = vpop.xlane.xlu2 %861 }
 0x37c   : > { %v864_v26 = vadd.f32 %v863_v22, %v862_v25 }
 0x37e   : > { %v1576_v27 = vmul.f32 -1.442695, %v864_v26 }
 0x380   : > { %1701 = vpow2.f32 %v1576_v27 }
 0x386   : > { %v1702_v28 = vpop.eup %1701 }
 0x387   : > { %v868_v29 = vadd.f32 1.0, %v1702_v28 }
 0x389   : > { %1703 = vrcp.f32 %v868_v29  ;;  %v880_v35 = vand.u32 2147483648, %v868_v29  ;;  %v878_v37 = vand.u32 2147483647, %v868_v29  ;;  %vm874_vm12 = vweird.f32 %v868_v29 }
 0x38b   : > { %v881_v39 = vor.u32 1.1754944e-38, %v880_v35  ;;  %vm879_vm14 = vcmp.eq.f32.partialorder %v878_v37, 8.507059e+37 }
 0x38f   : > { %v1704_v30 = vpop.eup %1703 }
 0x390   : > { %v870_v31 = vmul.f32 %v1704_v30, %v868_v29  ;;  %vm875_vm11 = vweird.f32 %v1704_v30 }
 0x391   : > { %vm876_vm13 = vmor %vm874_vm12, %vm875_vm11 }
 0x392   : > { %v871_v32 = vsub.f32 1.0, %v870_v31 }
 0x394   : > { %v872_v36 = vmul.f32 %v1704_v30, %v871_v32 }
 0x396   : > { %v873_v38 = vadd.f32 %v1704_v30, %v872_v36 }
 0x398   : > { %v877_v40 = vsel %vm876_vm13, %v1704_v30, %v873_v38 }
 0x399   : > { %v882_v41 = vsel %vm879_vm14, %v881_v39, %v877_v40 }
 0x39a   : > { %886 = vperm.xlu0 %1698, %v882_v41  }
 0x3a2   : > { %895 = vperm.xlu0 %1698, %v892_v42  }
 0x3aa   : > { %946 = vperm.xlu0 %1698, %v943_v47  }
 0x3b2   : > { %966 = vperm.xlu0 %1698, %v963_v50  }
 0x40c   : > { %v887_v51 = vpop.permute.xlu0 %886 }
 0x40d   : > { %v2370_v52 = vmul.f32 %v887_v51, %v2343_v43  ;;  %v2373_v53 = vmul.f32 %v887_v51, %v2345_v44 }
 0x40f   : > { %916 = vmatpush.msrb.mxu0 %v2370_v52  ;;  %936 = vmatpush.msrb.mxu1 %v2373_v53 }
 0x410   : > { %1577 = vmatmul.msk.f32.vlgmr.msrb.gmra.mxu0 %vm2638_vm10, %v891_v54  ;;  %1578 = vmatmul.msk.f32.vlgmr.msrb.gmra.mxu1 %vm2638_vm10, %v891_v54 }
 0x414   : > { %v896_v55 = vpop.permute.xlu0 %895 }
 0x41c   : > { %v947_v2 = vpop.permute.xlu0 %946 }
 0x424   : > { %v967_v19 = vpop.permute.xlu0 %966 }
 0x425   : > { %v969_v22 = vperm.slane %v967_v19, 0 }
 0x48d   : > { %v918_v57 = vpop.f32.mrf.mxu0  ;;  %v938_v58 = vpop.f32.mrf.mxu1 }
 0x48e   : > { %v919_v59 = vadd.f32 %v918_v57, %v896_v55  ;;  %v939_v60 = vadd.f32 %v938_v58, %v896_v55 }
 0x490   : > { %v941_v63 = vmax.f32 %v919_v59, 0.0  ;;  %v942_v43 = vmax.f32 %v939_v60, 0.0 }
 0x492   : > { %v949_v3 = vmul.f32 %v947_v2, %v941_v63  ;;  %v950_v44 = vmul.f32 %v947_v2, %v942_v43 }
 0x494   : > { %v951_v4 = vrot.slane %v949_v3, 4  ;;  %v957_v5 = vrot.slane %v950_v44, 4 }
 0x496   : > { %v952_v7 = vadd.f32 %v951_v4, %v949_v3  ;;  %v958_v8 = vadd.f32 %v957_v5, %v950_v44 }
 0x498   : > { %v953_v9 = vrot.slane %v952_v7, 2  ;;  %v959_v14 = vrot.slane %v958_v8, 2 }
 0x49a   : > { %v954_v17 = vadd.f32 %v953_v9, %v952_v7  ;;  %v960_v18 = vadd.f32 %v959_v14, %v958_v8 }
 0x49c   : > { %v955_v20 = vrot.slane %v954_v17, 1  ;;  %v961_v21 = vrot.slane %v960_v18, 1 }
 0x49e   : > { %v956_v25 = vadd.f32 %v955_v20, %v954_v17  ;;  %v962_v26 = vadd.f32 %v961_v21, %v960_v18 }
 0x4a0   : > { %v970_v27 = vadd.f32 %v969_v22, %v956_v25  ;;  %v971_v28 = vadd.f32 %v969_v22, %v962_v26 }
 0x4a2   : > { %v1579_v29 = vmul.f32 -1.442695, %v970_v27  ;;  %v1580_v30 = vmul.f32 -1.442695, %v971_v28 }
 0x4a4   : > { %1705 = vpow2.f32 %v1579_v29 }
 0x4a5   : > { %1707 = vpow2.f32 %v1580_v30 }
 0x4aa   : > { %v1706_v31 = vpop.eup %1705 }
 0x4ab   : > { %v1708_v32 = vpop.eup %1707  ;;  %v978_v35 = vadd.f32 1.0, %v1706_v31 }
 0x4ac   : > { %v979_v36 = vadd.f32 1.0, %v1708_v32 }
 0x4ad   : > { %1709 = vrcp.f32 %v978_v35  ;;  %v991_v42 = vand.u32 2147483648, %v978_v35  ;;  %v989_v51 = vand.u32 2147483647, %v978_v35  ;;  %vm985_vm11 = vweird.f32 %v978_v35 }
 0x4ae   : > { %1711 = vrcp.f32 %v979_v36  ;;  %v1006_v54 = vand.u32 2147483648, %v979_v36  ;;  %v1004_v57 = vand.u32 2147483647, %v979_v36  ;;  %vm1000_vm13 = vweird.f32 %v979_v36 }
 0x4af   : > { %v992_v59 = vor.u32 1.1754944e-38, %v991_v42  ;;  %vm990_vm14 = vcmp.eq.f32.partialorder %v989_v51, 8.507059e+37 }
 0x4b0   : > { %v1007_v43 = vor.u32 1.1754944e-38, %v1006_v54  ;;  %vm1005_vm8 = vcmp.eq.f32.partialorder %v1004_v57, 8.507059e+37 }
 0x4b3   : > { %v1710_v37 = vpop.eup %1709 }
 0x4b4   : > { %v1712_v38 = vpop.eup %1711  ;;  %v981_v39 = vmul.f32 %v1710_v37, %v978_v35  ;;  %vm986_vm15 = vweird.f32 %v1710_v37 }
 0x4b5   : > { %v996_v40 = vmul.f32 %v1712_v38, %v979_v36  ;;  %vm1001_vm9 = vweird.f32 %v1712_v38  ;;  %vm987_vm12 = vmor %vm985_vm11, %vm986_vm15 }
 0x4b6   : > { %v982_v41 = vsub.f32 1.0, %v981_v39  ;;  %vm1002_vm10 = vmor %vm1000_vm13, %vm1001_vm9 }
 0x4b7   : > { %v997_v47 = vsub.f32 1.0, %v996_v40 }
 0x4b8   : > { %v983_v50 = vmul.f32 %v1710_v37, %v982_v41 }
 0x4b9   : > { %v998_v55 = vmul.f32 %v1712_v38, %v997_v47 }
 0x4ba   : > { %v984_v58 = vadd.f32 %v1710_v37, %v983_v50 }
 0x4bb   : > { %v999_v60 = vadd.f32 %v1712_v38, %v998_v55 }
 0x4bc   : > { %v988_v63 = vsel %vm987_vm12, %v1710_v37, %v984_v58 }
 0x4bd   : > { %v993_v2 = vsel %vm990_vm14, %v992_v59, %v988_v63  ;;  %v1003_v3 = vsel %vm1002_vm10, %v1712_v38, %v999_v60 }
 0x4be   : > { %v1010_v44 = vmul.f32 %v993_v2, %v2370_v52  ;;  %v1008_v4 = vsel %vm1005_vm8, %v1007_v43, %v1003_v3  ;;  %vm2656_vm8 = vcmask 588800  }
 0x4bf   : > { %v1011_v5 = vmul.f32 %v1008_v4, %v2373_v53  ;;  %vm2657_vm10 = vmmov %vm2656_vm8 }
 0x4c0   : > { %v2382_v7 = vadd.f32 %v1010_v44, %v2112_v0  ;;  %v1582_v0 = vld [vmem:[%s2617_s3 + $0x8] sm:$0xff] }
 0x4c1   : > { %v2385_v8 = vadd.f32 %v1011_v5, %v2120_v1 }
 0x4c2   : > { %1066 = vrot.lane.b32.xlu0 %v2382_v7, %s1927_s23  ;;  %1074 = vrot.lane.b32.xlu2 %v2382_v7, %s1928_s24 }
 0x4c3   : > { %1076 = vrot.lane.b32.xlu1 %v2385_v8, %s1928_s24 }
 0x4ca   : > { %1068 = vrot.lane.b32.xlu0 %v2385_v8, %s1927_s23  ;;  %1060 = vrot.lane.b32.xlu2 %v2385_v8, %s1929_s25 }
 0x4cb   : > { %1050 = vrot.lane.b32.xlu1 %v2382_v7, %s1930_s28 }
 0x4d2   : > { %1058 = vrot.lane.b32.xlu0 %v2382_v7, %s1929_s25  ;;  %1042 = vrot.lane.b32.xlu2 %v2382_v7, %s1931_s21 }
 0x4d3   : > { %1044 = vrot.lane.b32.xlu1 %v2385_v8, %s1931_s21 }
 0x4da   : > { %1052 = vrot.lane.b32.xlu0 %v2385_v8, %s1930_s28  ;;  %1036 = vrot.lane.b32.xlu2 %v2385_v8, %s1932_s26 }
 0x4db   : > { %1026 = vrot.lane.b32.xlu1 %v2382_v7, %s1933_s27 }
 0x4e2   : > { %1034 = vrot.lane.b32.xlu0 %v2382_v7, %s1932_s26  ;;  %1018 = vrot.lane.b32.xlu2 %v2382_v7, %s1934_s18 }
 0x4e3   : > { %1020 = vrot.lane.b32.xlu1 %v2385_v8, %s1934_s18 }
 0x4ea   : > { %1028 = vrot.lane.b32.xlu0 %v2385_v8, %s1933_s27 }
 0x4f2   : > { %1084 = vperm.xlu0 %1698, %v1582_v0  }
 0x51c   : > { %v1075_v1 = vpop.permute.xlu2 %1074 }
 0x524   : > { %v1061_v25 = vpop.permute.xlu2 %1060 }
 0x52c   : > { %v1043_v36 = vpop.permute.xlu2 %1042 }
 0x534   : > { %v1067_v52 = vpop.permute.xlu0 %1066  ;;  %v1037_v51 = vpop.permute.xlu2 %1036 }
 0x535   : > { %v1077_v53 = vpop.permute.xlu1 %1076 }
 0x536   : > { %v1078_v9 = vsel %vm656_vm1, %v1075_v1, %v1077_v53  ;;  %v1079_v14 = vsel %vm656_vm1, %v1077_v53, %v1075_v1 }
 0x537   : > { %v1080_v17 = vmul.f32 %v1078_v9, %v2158_v10  ;;  %v1081_v18 = vmul.f32 %v1079_v14, %v2160_v11  ;;  %v1581_v14 = vld [vmem:[%s2616_s2 + $0x8] sm:$0xff] }
 0x539   : > { %1097 = vmatpush.msrb.mxu2 %v1080_v17  ;;  %1117 = vmatpush.msrb.mxu3 %v1081_v18 }
 0x53c   : > { %v1069_v19 = vpop.permute.xlu0 %1068  ;;  %v1019_v2 = vpop.permute.xlu2 %1018 }
 0x53d   : > { %v1051_v20 = vpop.permute.xlu1 %1050  ;;  %v1070_v21 = vsel %vm642_vm0, %v1067_v52, %v1069_v19  ;;  %v1071_v22 = vsel %vm642_vm0, %v1069_v19, %v1067_v52 }
 0x53e   : > { %v1072_v26 = vmul.f32 %v1070_v21, %v2166_v15  ;;  %v1073_v27 = vmul.f32 %v1071_v22, %v2168_v16 }
 0x540   : > { %1098 = vmatpush.msrb.mxu2 %v1072_v26  ;;  %1118 = vmatpush.msrb.mxu3 %v1073_v27 }
 0x544   : > { %v1059_v28 = vpop.permute.xlu0 %1058 }
 0x545   : > { %v1062_v29 = vsel %vm628_vm2, %v1059_v28, %v1061_v25  ;;  %v1063_v30 = vsel %vm628_vm2, %v1061_v25, %v1059_v28  ;;  %v1045_v31 = vpop.permute.xlu1 %1044  ;;  %v1585_v28 = vld [vmem:[%s2619_s5 + $0x8] sm:$0xff] }
 0x546   : > { %v1064_v32 = vmul.f32 %v1062_v29, %v2180_v23  ;;  %v1065_v35 = vmul.f32 %v1063_v30, %v2182_v24  ;;  %v1046_v42 = vsel %vm600_vm4, %v1043_v36, %v1045_v31  ;;  %v1047_v47 = vsel %vm600_vm4, %v1045_v31, %v1043_v36 }
 0x547   : > { %v1048_v54 = vmul.f32 %v1047_v47, %v2216_v45  ;;  %v1049_v55 = vmul.f32 %v1046_v42, %v2220_v46 }
 0x548   : > { %1099 = vmatpush.msrb.mxu2 %v1064_v32  ;;  %1119 = vmatpush.msrb.mxu3 %v1065_v35 }
 0x54c   : > { %v1053_v37 = vpop.permute.xlu0 %1052 }
 0x54d   : > { %v1054_v38 = vsel %vm614_vm3, %v1051_v20, %v1053_v37  ;;  %v1055_v39 = vsel %vm614_vm3, %v1053_v37, %v1051_v20  ;;  %v1027_v50 = vpop.permute.xlu1 %1026 }
 0x54e   : > { %v1056_v40 = vmul.f32 %v1054_v38, %v2196_v33  ;;  %v1057_v41 = vmul.f32 %v1055_v39, %v2198_v34 }
 0x550   : > { %1100 = vmatpush.msrb.mxu2 %v1056_v40  ;;  %1120 = vmatpush.msrb.mxu3 %v1057_v41 }
 0x552   : > { %1101 = vmatpush.msrb.mxu2 %v2382_v7  ;;  %1121 = vmatpush.msrb.mxu3 %v2385_v8 }
 0x554   : > { %v1035_v57 = vpop.permute.xlu0 %1034  ;;  %1102 = vmatpush.msrb.mxu2 %v1048_v54  ;;  %1122 = vmatpush.msrb.mxu3 %v1049_v55 }
 0x555   : > { %v1038_v58 = vsel %vm586_vm5, %v1035_v57, %v1037_v51  ;;  %v1039_v59 = vsel %vm586_vm5, %v1037_v51, %v1035_v57  ;;  %v1021_v43 = vpop.permute.xlu1 %1020 }
 0x556   : > { %v1040_v60 = vmul.f32 %v1039_v59, %v2223_v48  ;;  %v1041_v63 = vmul.f32 %v1038_v58, %v2225_v49  ;;  %v1022_v44 = vsel %vm558_vm7, %v1019_v2, %v1021_v43  ;;  %v1023_v4 = vsel %vm558_vm7, %v1021_v43, %v1019_v2 }
 0x557   : > { %v1024_v53 = vmul.f32 %v1023_v4, %v2257_v12  ;;  %v1025_v9 = vmul.f32 %v1022_v44, %v2259_v13 }
 0x558   : > { %1103 = vmatpush.msrb.mxu2 %v1040_v60  ;;  %1123 = vmatpush.msrb.mxu3 %v1041_v63 }
 0x55c   : > { %v1029_v3 = vpop.permute.xlu0 %1028 }
 0x55d   : > { %v1030_v5 = vsel %vm572_vm6, %v1027_v50, %v1029_v3  ;;  %v1031_v0 = vsel %vm572_vm6, %v1029_v3, %v1027_v50 }
 0x55e   : > { %v1032_v1 = vmul.f32 %v1031_v0, %v2243_v61  ;;  %v1033_v52 = vmul.f32 %v1030_v5, %v2245_v62 }
 0x560   : > { %1104 = vmatpush.msrb.mxu2 %v1032_v1  ;;  %1124 = vmatpush.msrb.mxu3 %v1033_v52 }
 0x562   : > { %1105 = vmatpush.msrb.mxu2 %v1024_v53  ;;  %1125 = vmatpush.msrb.mxu3 %v1025_v9 }
 0x563   : > { %1583 = vmatmul.msk.f32.vlgmr.msrb.gmra.mxu2 %vm2656_vm8, %v1581_v14  ;;  %1584 = vmatmul.msk.f32.vlgmr.msrb.gmra.mxu3 %vm2657_vm10, %v1581_v14 }
 0x564   : > { %v1085_v17 = vpop.permute.xlu0 %1084 }
 0x5e6   : > { %v1107_v18 = vpop.f32.mrf.mxu2  ;;  %v1127_v19 = vpop.f32.mrf.mxu3 }
 0x5e7   : > { %v1108_v20 = vadd.f32 %v1107_v18, %v1085_v17  ;;  %v1128_v21 = vadd.f32 %v1127_v19, %v1085_v17  ;;  %v1135_v19 = vld [vmem:[#allocation2 + $0x8] sm:$0xff] }
 0x5e9   : > { %v1130_v22 = vmax.f32 %v1108_v20, 0.0  ;;  %v1131_v25 = vmax.f32 %v1128_v21, 0.0 }
 0x5eb   : > { %v1132_v26 = vadd.f32 %v1130_v22, %v2382_v7  ;;  %v1133_v27 = vadd.f32 %v1131_v25, %v2385_v8 }
 0x5ed   : > { %1186 = vrot.lane.b32.xlu0 %v1132_v26, %s1927_s23  ;;  %1194 = vrot.lane.b32.xlu2 %v1132_v26, %s1928_s24 }
 0x5ee   : > { %1196 = vrot.lane.b32.xlu1 %v1133_v27, %s1928_s24 }
 0x5f5   : > { %1180 = vrot.lane.b32.xlu0 %v1133_v27, %s1929_s25  ;;  %1188 = vrot.lane.b32.xlu2 %v1133_v27, %s1927_s23  ;;  %s2664_s23 = sld [smem:[#allocation24_spill]] }
 0x5f6   : > { %1178 = vrot.lane.b32.xlu1 %v1132_v26, %s1929_s25  ;;  %s527_s25 = scalar_lea.vmem [#allocation10], %s1562_s14 }
 0x5fb   : > { %s1445_s24 = scalar_lea.hbm %s2664_s23, %s1604_s29  ;;  %s1865_s19 = scalar_lea.hbm %s2664_s23, 32 }
 0x5fd   : > { %1162 = vrot.lane.b32.xlu0 %v1132_v26, %s1931_s21  ;;  %1170 = vrot.lane.b32.xlu2 %v1132_v26, %s1930_s28 }
 0x5fe   : > { %1172 = vrot.lane.b32.xlu1 %v1133_v27, %s1930_s28  ;;  %s1447_s28 = sshll.u32 %s527_s25, 4  ;;  %s1448_s28 = int_to_ptr.vmem [resolvable:$true] %s1447_s28 }
 0x605   : > { %1156 = vrot.lane.b32.xlu0 %v1133_v27, %s1932_s26  ;;  %1164 = vrot.lane.b32.xlu2 %v1133_v27, %s1931_s21  ;;  %s1449_s21 = sshll.u32 %s1445_s24, 4  ;;  %s1450_s21 = int_to_ptr.hbm [resolvable:$true] %s1449_s21 }
 0x606   : > { %1154 = vrot.lane.b32.xlu1 %v1132_v26, %s1932_s26  ;;  %s1434_s26 = scalar_lea.sflag [#allocation4], %s525_s4 }
 0x60d   : > { %1138 = vrot.lane.b32.xlu0 %v1132_v26, %s1934_s18  ;;  %1146 = vrot.lane.b32.xlu2 %v1132_v26, %s1933_s27 }
 0x60e   : > { %1148 = vrot.lane.b32.xlu1 %v1133_v27, %s1933_s27  ;;  %s1859_s27 = sshra.s32 %s1450_s21, 4  ;;  %s1860_s27 = int_to_ptr.hbm [resolvable:$true] %s1859_s27 }
 0x60f   : > { %p1866_p3 = scmp.lt.s32.totalorder %s1860_s27, %s2664_s23 }
 0x615   : > { %1140 = vrot.lane.b32.xlu2 %v1133_v27, %s1934_s18  ;;  %s1861_s18 = scalar_lea.hbm %s1860_s27, 16 }
 0x616   : > { %1204 = vperm.xlu1 %1697, %v1585_v28   ;;  %p1862_p0 = scmp.ne.s32.totalorder %s1860_s27, %s1861_s18  ;;  %p1867_p4 = scmp.lt.s32.totalorder %s1865_s19, %s1861_s18 }
 0x618   : > { %p1863_p1 = pnand %p1862_p0, %p2050_p5  ;;  %p1868_p7 = por %p1867_p4, %p1866_p3 }
 0x61a   : > { %p1864_p2 = pneg %p1863_p1 }
 0x61c   : > { %p1869_p8 = pnand %p1868_p7, %p1864_p2 }
 0x647   : > { %v1195_v29 = vpop.permute.xlu2 %1194 }
 0x64f   : > { %v1189_v30 = vpop.permute.xlu2 %1188 }
 0x657   : > { %v1171_v39 = vpop.permute.xlu2 %1170 }
 0x65f   : > { %v1187_v31 = vpop.permute.xlu0 %1186  ;;  %v1165_v57 = vpop.permute.xlu2 %1164 }
 0x660   : > { %v1197_v32 = vpop.permute.xlu1 %1196  ;;  %v1190_v35 = vsel %vm642_vm0, %v1187_v31, %v1189_v30  ;;  %v1191_v36 = vsel %vm642_vm0, %v1189_v30, %v1187_v31  ;;  %vm2658_vm0 = vmmov %vm2656_vm8 }
 0x661   : > { %v1198_v37 = vsel %vm656_vm1, %v1195_v29, %v1197_v32  ;;  %v1199_v38 = vsel %vm656_vm1, %v1197_v32, %v1195_v29  ;;  %v1192_v42 = vmul.f32 %v1190_v35, %v2166_v15  ;;  %v1193_v47 = vmul.f32 %v1191_v36, %v2168_v16  ;;  %vm2659_vm1 = vmmov %vm2658_vm0  ;;  %v1588_v35 = vld [vmem:[%s2621_s7 + $0x1] sm:$0x1] }
 0x662   : > { %v1200_v40 = vmul.f32 %v1198_v37, %v2158_v10  ;;  %v1201_v41 = vmul.f32 %v1199_v38, %v2160_v11 }
 0x664   : > { %1217 = vmatpush.msra.mxu0 %v1200_v40  ;;  %1237 = vmatpush.msra.mxu1 %v1201_v41 }
 0x666   : > { %1218 = vmatpush.msra.mxu0 %v1192_v42  ;;  %1238 = vmatpush.msra.mxu1 %v1193_v47  ;;  %v1589_v42 = vld [vmem:[%s2623_s9 + $0x8] sm:$0xff] }
 0x667   : > { %v1181_v50 = vpop.permute.xlu0 %1180  ;;  %v1147_v43 = vpop.permute.xlu2 %1146 }
 0x668   : > { %v1179_v51 = vpop.permute.xlu1 %1178 }
 0x669   : > { %v1182_v54 = vsel %vm628_vm2, %v1179_v51, %v1181_v50  ;;  %v1183_v55 = vsel %vm628_vm2, %v1181_v50, %v1179_v51  ;;  %vm2660_vm2 = vcmask 64512  }
 0x66a   : > { %v1184_v10 = vmul.f32 %v1182_v54, %v2180_v23  ;;  %v1185_v11 = vmul.f32 %v1183_v55, %v2182_v24  ;;  %vm2662_vm15 = vmmov %vm2660_vm2 }
 0x66b   : > { %vm2663_vm9 = vmmov %vm2660_vm2 }
 0x66c   : > { %1219 = vmatpush.msra.mxu0 %v1184_v10  ;;  %1239 = vmatpush.msra.mxu1 %v1185_v11 }
 0x66f   : > { %v1163_v15 = vpop.permute.xlu0 %1162 }
 0x670   : > { %v1173_v16 = vpop.permute.xlu1 %1172  ;;  %v1166_v23 = vsel %vm600_vm4, %v1163_v15, %v1165_v57  ;;  %v1167_v24 = vsel %vm600_vm4, %v1165_v57, %v1163_v15 }
 0x671   : > { %v1174_v58 = vsel %vm614_vm3, %v1171_v39, %v1173_v16  ;;  %v1175_v59 = vsel %vm614_vm3, %v1173_v16, %v1171_v39  ;;  %v1168_v2 = vmul.f32 %v1167_v24, %v2216_v45  ;;  %v1169_v3 = vmul.f32 %v1166_v23, %v2220_v46  ;;  %v1141_v46 = vpop.permute.xlu2 %1140  ;;  %v1269_v39 = vld [vmem:[#allocation7 + $0x8] sm:$0xff]  ;;  %vm2661_vm3 = vmmov %vm2660_vm2 }
 0x672   : > { %v1176_v60 = vmul.f32 %v1174_v58, %v2196_v33  ;;  %v1177_v63 = vmul.f32 %v1175_v59, %v2198_v34  ;;  %v1591_v24 = vld [vmem:[%s2625_s11 + $0x8] sm:$0xff] }
 0x674   : > { %1220 = vmatpush.msra.mxu0 %v1176_v60  ;;  %1240 = vmatpush.msra.mxu1 %v1177_v63 }
 0x676   : > { %1221 = vmatpush.msra.mxu0 %v1132_v26  ;;  %1241 = vmatpush.msra.mxu1 %v1133_v27 }
 0x677   : > { %v1157_v44 = vpop.permute.xlu0 %1156 }
 0x678   : > { %1222 = vmatpush.msra.mxu0 %v1168_v2  ;;  %1242 = vmatpush.msra.mxu1 %v1169_v3  ;;  %v1155_v33 = vpop.permute.xlu1 %1154  ;;  %v1595_v2 = vld [vmem:[%s2627_s13 + $0x1] sm:$0x1] }
 0x679   : > { %v1158_v34 = vsel %vm586_vm5, %v1155_v33, %v1157_v44  ;;  %v1159_v4 = vsel %vm586_vm5, %v1157_v44, %v1155_v33 }
 0x67a   : > { %v1160_v5 = vmul.f32 %v1159_v4, %v2223_v48  ;;  %v1161_v0 = vmul.f32 %v1158_v34, %v2225_v49  ;;  %v1305_v34 = vld [vmem:[#allocation8 + $0x8] sm:$0xff] }
 0x67c   : > { %1223 = vmatpush.msra.mxu0 %v1160_v5  ;;  %1243 = vmatpush.msra.mxu1 %v1161_v0 }
 0x67f   : > { %v1139_v45 = vpop.permute.xlu0 %1138 }
 0x680   : > { %v1149_v1 = vpop.permute.xlu1 %1148  ;;  %v1142_v52 = vsel %vm558_vm7, %v1139_v45, %v1141_v46  ;;  %v1143_v53 = vsel %vm558_vm7, %v1141_v46, %v1139_v45 }
 0x681   : > { %v1150_v9 = vsel %vm572_vm6, %v1147_v43, %v1149_v1  ;;  %v1151_v14 = vsel %vm572_vm6, %v1149_v1, %v1147_v43  ;;  %v1144_v17 = vmul.f32 %v1143_v53, %v2257_v12  ;;  %v1145_v18 = vmul.f32 %v1142_v52, %v2259_v13  ;;  %v1594_v43 = vld [vmem:[%s2626_s12 + $0x8] sm:$0xff] }
 0x682   : > { %v1152_v48 = vmul.f32 %v1151_v14, %v2243_v61  ;;  %v1153_v49 = vmul.f32 %v1150_v9, %v2245_v62  ;;  %v1255_v62 = vld [vmem:[#allocation5 + $0x8] sm:$0xff] }
 0x684   : > { %1224 = vmatpush.msra.mxu0 %v1152_v48  ;;  %1244 = vmatpush.msra.mxu1 %v1153_v49 }
 0x686   : > { %1225 = vmatpush.msra.mxu0 %v1144_v17  ;;  %1245 = vmatpush.msra.mxu1 %v1145_v18 }
 0x687   : > { %1586 = vmatmul.msk.f32.vlgmr.msra.gmra.mxu0 %vm2658_vm0, %v1135_v19  ;;  %1587 = vmatmul.msk.f32.vlgmr.msra.gmra.mxu1 %vm2659_vm1, %v1135_v19 }
 0x688   : > { %v1205_v20 = vpop.permute.xlu1 %1204 }
 0x704   : > { %v1227_v6 = vpop.f32.mrf.mxu0  ;;  %v1247_v21 = vpop.f32.mrf.mxu1 }
 0x705   : > { %v1228_v22 = vadd.f32 %v1227_v6, %v1205_v20  ;;  %v1248_v61 = vadd.f32 %v1247_v21, %v1205_v20 }
 0x707   : > { %v1250_v25 = vadd.f32 %v1248_v61, %v1228_v22 }
 0x709   : > { %1251 = vadd.xlane.f32.xlu0 %v1250_v25 }
 0x77c   : > { %v1252_v12 = vpop.xlane.xlu0 %1251 }
 0x77d   : > { %v1253_v13 = vmul.f32 %v1252_v12, %v2349_v56 }
 0x77f   : > { %v1256_v26 = vmul.f32 %v1255_v62, %v1253_v13 }
 0x781   : > { %v1257_v27 = vsel %vm2660_vm2, %v1256_v26, 0.0 }
 0x782   : > { %v1258_v28 = vrot.slane %v1257_v27, 4 }
 0x784   : > { %v1259_v29 = vadd.f32 %v1258_v28, %v1257_v27 }
 0x786   : > { %v1260_v30 = vrot.slane %v1259_v29, 2 }
 0x788   : > { %v1261_v31 = vadd.f32 %v1260_v30, %v1259_v29 }
 0x78a   : > { %v1262_v32 = vrot.slane %v1261_v31, 1 }
 0x78c   : > { %v1263_v36 = vadd.f32 %v1262_v32, %v1261_v31 }
 0x78e   : > { %v1266_v37 = vadd.f32 %v1588_v35, %v1263_v36 }
 0x790   : > { %v1267_v38 = vmax.f32 %v1266_v37, 0.0 }
 0x792   : > { %v1270_v40 = vperm.slane %v1267_v38, 0 }
 0x794   : > { %v1271_v41 = vmul.f32 %v1270_v40, %v1269_v39 }
 0x796   : > { %v1272_v56 = vsel %vm2661_vm3, %v1271_v41, 0.0 }
 0x797   : > { %1273 = vadd.xlane.f32.xlu2 %v1272_v56 }
 0x80a   : > { %v1274_v47 = vpop.xlane.xlu2 %1273 }
 0x80b   : > { %v1277_v50 = vadd.f32 %v1589_v42, %v1274_v47 }
 0x80d   : > { %v1590_v51 = vmul.f32 -1.442695, %v1277_v50 }
 0x80f   : > { %1713 = vpow2.f32 %v1590_v51 }
 0x815   : > { %v1714_v54 = vpop.eup %1713 }
 0x816   : > { %v1281_v55 = vadd.f32 1.0, %v1714_v54 }
 0x818   : > { %1715 = vrcp.f32 %v1281_v55  ;;  %v1293_v15 = vand.u32 2147483648, %v1281_v55  ;;  %v1291_v58 = vand.u32 2147483647, %v1281_v55  ;;  %vm1287_vm5 = vweird.f32 %v1281_v55 }
 0x81a   : > { %v1294_v60 = vor.u32 1.1754944e-38, %v1293_v15  ;;  %vm1292_vm7 = vcmp.eq.f32.partialorder %v1291_v58, 8.507059e+37 }
 0x81e   : > { %v1716_v10 = vpop.eup %1715 }
 0x81f   : > { %v1283_v11 = vmul.f32 %v1716_v10, %v1281_v55  ;;  %vm1288_vm4 = vweird.f32 %v1716_v10 }
 0x820   : > { %vm1289_vm6 = vmor %vm1287_vm5, %vm1288_vm4 }
 0x821   : > { %v1284_v57 = vsub.f32 1.0, %v1283_v11 }
 0x823   : > { %v1285_v16 = vmul.f32 %v1716_v10, %v1284_v57 }
 0x825   : > { %v1286_v59 = vadd.f32 %v1716_v10, %v1285_v16 }
 0x827   : > { %v1290_v63 = vsel %vm1289_vm6, %v1716_v10, %v1286_v59 }
 0x828   : > { %v1295_v23 = vsel %vm1292_vm7, %v1294_v60, %v1290_v63 }
 0x829   : > { %1299 = vperm.xlu1 %1697, %v1295_v23  }
 0x831   : > { %1310 = vperm.xlu1 %1697, %v1591_v24  }
 0x839   : > { %1362 = vperm.xlu1 %1697, %v1594_v43  }
 0x841   : > { %1383 = vperm.xlu1 %1697, %v1595_v2  }
 0x89b   : > { %v1300_v3 = vpop.permute.xlu1 %1299 }
 0x89c   : > { %v2566_v44 = vmul.f32 %v1300_v3, %v1228_v22  ;;  %v2568_v33 = vmul.f32 %v1300_v3, %v1248_v61 }
 0x89e   : > { %1331 = vmatpush.msra.mxu2 %v2566_v44  ;;  %1351 = vmatpush.msra.mxu3 %v2568_v33 }
 0x89f   : > { %1592 = vmatmul.msk.f32.vlgmr.msra.gmra.mxu2 %vm2662_vm15, %v1305_v34  ;;  %1593 = vmatmul.msk.f32.vlgmr.msra.gmra.mxu3 %vm2663_vm9, %v1305_v34 }
 0x8a3   : > { %v1311_v4 = vpop.permute.xlu1 %1310 }
 0x8ab   : > { %v1363_v53 = vpop.permute.xlu1 %1362 }
 0x8b3   : > { %v1384_v22 = vpop.permute.xlu1 %1383 }
 0x8b4   : > { %v1386_v62 = vperm.slane %v1384_v22, 0 }
 0x922   : > { %v1333_v5 = vpop.f32.mrf.mxu2  ;;  %v1353_v0 = vpop.f32.mrf.mxu3 }
 0x923   : > { %v1334_v45 = vadd.f32 %v1333_v5, %v1311_v4  ;;  %v1354_v46 = vadd.f32 %v1353_v0, %v1311_v4 }
 0x925   : > { %v1356_v1 = vmax.f32 %v1334_v45, 0.0  ;;  %v1357_v52 = vmax.f32 %v1354_v46, 0.0 }
 0x927   : > { %v1365_v9 = vmul.f32 %v1363_v53, %v1356_v1  ;;  %v1366_v14 = vmul.f32 %v1363_v53, %v1357_v52 }
 0x929   : > { %v1367_v48 = vrot.slane %v1365_v9, 4  ;;  %v1373_v49 = vrot.slane %v1366_v14, 4 }
 0x92b   : > { %v1368_v17 = vadd.f32 %v1367_v48, %v1365_v9  ;;  %v1374_v18 = vadd.f32 %v1373_v49, %v1366_v14 }
 0x92d   : > { %v1369_v19 = vrot.slane %v1368_v17, 2  ;;  %v1375_v20 = vrot.slane %v1374_v18, 2 }
 0x92f   : > { %v1370_v6 = vadd.f32 %v1369_v19, %v1368_v17  ;;  %v1376_v21 = vadd.f32 %v1375_v20, %v1374_v18 }
 0x931   : > { %v1371_v61 = vrot.slane %v1370_v6, 1  ;;  %v1377_v25 = vrot.slane %v1376_v21, 1 }
 0x933   : > { %v1372_v12 = vadd.f32 %v1371_v61, %v1370_v6  ;;  %v1378_v13 = vadd.f32 %v1377_v25, %v1376_v21 }
 0x935   : > { %v1387_v26 = vadd.f32 %v1386_v62, %v1372_v12  ;;  %v1388_v27 = vadd.f32 %v1386_v62, %v1378_v13 }
 0x937   : > { %v1596_v28 = vmul.f32 -1.442695, %v1387_v26  ;;  %v1597_v29 = vmul.f32 -1.442695, %v1388_v27 }
 0x939   : > { %1717 = vpow2.f32 %v1596_v28 }
 0x93a   : > { %1719 = vpow2.f32 %v1597_v29 }
 0x93f   : > { %v1718_v30 = vpop.eup %1717 }
 0x940   : > { %v1720_v31 = vpop.eup %1719  ;;  %v1395_v32 = vadd.f32 1.0, %v1718_v30 }
 0x941   : > { %v1396_v35 = vadd.f32 1.0, %v1720_v31 }
 0x942   : > { %1721 = vrcp.f32 %v1395_v32  ;;  %v1408_v41 = vand.u32 2147483648, %v1395_v32  ;;  %v1406_v47 = vand.u32 2147483647, %v1395_v32  ;;  %vm1402_vm13 = vweird.f32 %v1395_v32 }
 0x943   : > { %1723 = vrcp.f32 %v1396_v35  ;;  %v1423_v50 = vand.u32 2147483648, %v1396_v35  ;;  %v1421_v54 = vand.u32 2147483647, %v1396_v35  ;;  %vm1417_vm8 = vweird.f32 %v1396_v35 }
 0x944   : > { %v1409_v10 = vor.u32 1.1754944e-38, %v1408_v41  ;;  %vm1407_vm10 = vcmp.eq.f32.partialorder %v1406_v47, 8.507059e+37 }
 0x945   : > { %v1424_v15 = vor.u32 1.1754944e-38, %v1423_v50  ;;  %vm1422_vm1 = vcmp.eq.f32.partialorder %v1421_v54, 8.507059e+37 }
 0x948   : > { %v1722_v36 = vpop.eup %1721 }
 0x949   : > { %v1724_v37 = vpop.eup %1723  ;;  %v1398_v38 = vmul.f32 %v1722_v36, %v1395_v32  ;;  %vm1403_vm11 = vweird.f32 %v1722_v36 }
 0x94a   : > { %v1413_v39 = vmul.f32 %v1724_v37, %v1396_v35  ;;  %vm1418_vm12 = vweird.f32 %v1724_v37  ;;  %vm1404_vm14 = vmor %vm1402_vm13, %vm1403_vm11 }
 0x94b   : > { %v1399_v40 = vsub.f32 1.0, %v1398_v38  ;;  %vm1419_vm0 = vmor %vm1417_vm8, %vm1418_vm12 }
 0x94c   : > { %v1414_v56 = vsub.f32 1.0, %v1413_v39 }
 0x94d   : > { %v1400_v42 = vmul.f32 %v1722_v36, %v1399_v40 }
 0x94e   : > { %v1415_v51 = vmul.f32 %v1724_v37, %v1414_v56 }
 0x94f   : > { %v1401_v55 = vadd.f32 %v1722_v36, %v1400_v42 }
 0x950   : > { %v1416_v11 = vadd.f32 %v1724_v37, %v1415_v51 }
 0x951   : > { %v1405_v57 = vsel %vm1404_vm14, %v1722_v36, %v1401_v55 }
 0x952   : > { %v1410_v16 = vsel %vm1407_vm10, %v1409_v10, %v1405_v57  ;;  %v1420_v58 = vsel %vm1419_vm0, %v1724_v37, %v1416_v11 }
 0x953   : > { %v1425_v59 = vsel %vm1422_vm1, %v1424_v15, %v1420_v58  ;;  %v1427_v60 = vmul.f32 %v1410_v16, %v2566_v44 }
 0x954   : > { %v1428_v63 = vmul.f32 %v1425_v59, %v2568_v33 }
 0x955   : > { %v1429_v23 = vadd.f32 %v1427_v60, %v2382_v7 }
 0x956   : > { %v1430_v24 = vadd.f32 %v1428_v63, %v2385_v8 }
 0x957   : > { %1431 = vst [vmem:[%s527_s25] sm:$0xff] %v1429_v23 }
 0x958   : > { %1432 = vst [vmem:[%s527_s25 + $0x8] sm:$0xff] %v1430_v24 }
 0x959   : > { %1872 = shalt.err (!%p1869_p8)
}
 0x95a   : > { %1621 = dma.vmem_to_hbm [thread:$0]  (%p2050_p5), %s1448_s28, 256, %s1450_s21, %s1434_s26  }
 0x95b PF: > { %s2666_s4 = sld [smem:[#allocation17_spill]] }
 0x95c   : > { %s2667_s29 = sld [smem:[#allocation15_spill]] }
 0x961   : > { %p1648_p9 = scmp.ge.s32.totalorder %s2666_s4, 2 }
 0x962   : > { %s1461_s22 = sand.u32 1, %s2667_s29  }
 0x963   : > { %p1637_p10 = pnand %p1648_p9, %p2054_p6  ;;  %s1462_s24 = scalar_lea.sflag [#allocation4], %s1461_s22 }
 0x965   : > { %p1638_p11 = pneg %p1637_p10 }
 0x967   : > { %1902 = dma.done.wait (%p1638_p11), %s1462_s24, 256  }
 0x968   : > { %1904 = vsyncadd (%p1638_p11), %s1462_s24, 4294967040  ;;  %s2669_s16 = sld [smem:[#allocation18_spill]]  ;;  %s2672_s29 = smov %s1911_s30 }
 0x969   : > { %s2670_s25 = sld [smem:[#allocation16_spill]] }
 0x96a   : > { %s2671_s15 = sld [smem:[#allocation19_spill]] }
 0x96e   : > { %p27_p12 = scmp.ge.s32.totalorder %s2669_s16, 4  }
 0x96f   : > { %s2673_s30 = smov %s2670_s25 }
 0x970   :  { %29 = sbr.rel (!%p27_p12) target bundleno = 10 (0xa), region = 147 }
 0x975   :  { %1468 = vsyncpa [#allocation3], 1 }
 0x976   :  { %1470 = vsyncpa [#allocation3 + $0x1], 1 }
 0x977   :  { %1471 = vsyncpa [#allocation6], 1 }
 0x978   :  { %1472 = vsyncpa [#allocation9], 1 }
 0x979   :  { %1473 = vsyncpa [#allocation4], 1 }
 0x97a   :  { %1475 = vsyncpa [#allocation4 + $0x1], 1 }

</bundles_post_ra>
